<compile_context>
chip_gen: v6e
topology: v6e:2x2x1
jax: 0.10.0
libtpu: 0.0.40
codegen_flags: <defaults>
</compile_context>

<pallas_src>
import math
import functools
import jax
import jax.numpy as jnp
from jax.experimental import pallas as pl
from jax.experimental.pallas import tpu as pltpu

# ---------------- model hyperparameters (tiny synthetic BERT) ----------------
VOCAB = 50
TYPE_VOCAB = 2
MAX_POS = 16
HIDDEN = 32
NUM_HEADS = 2
HEAD_DIM = HIDDEN // NUM_HEADS
INTERMEDIATE = 64
NUM_LAYERS = 2
LN_EPS = 1e-12
NEG_INF = -1e9


# ------------------------------ in-kernel helpers ------------------------------
def _ln_rows(x, gamma, beta):
    """LayerNorm over the hidden (last) dim, BERT eps=1e-12."""
    mu = jnp.mean(x, axis=-1, keepdims=True)
    var = jnp.mean((x - mu) ** 2, axis=-1, keepdims=True)
    return (x - mu) * jax.lax.rsqrt(var + LN_EPS) * gamma + beta


def _gelu(x):
    """Exact (erf) GELU, as in HF BERT."""
    return 0.5 * x * (1.0 + jax.lax.erf(x * (1.0 / math.sqrt(2.0))))


# ----------------------- single fused forward kernel -----------------------
def _fused_bert_kernel(B, S,
                       ids_ref, type_ref, mask_ref,
                       we_ref, pe_ref, te_ref, eg_ref, eb_ref,
                       wqkv_ref, bqkv_ref, wo_ref, bo_ref, ln1g_ref, ln1b_ref,
                       w1_ref, b1_ref, w2_ref, b2_ref, ln2g_ref, ln2b_ref,
                       o_ref):
    f32, bf16 = jnp.float32, jnp.bfloat16
    BS = B * S

    # ---- embeddings as one-hot matmuls (exact select, no XLA gather / HBM intermediates) ----
    word_oh = (ids_ref[...] ==
               jax.lax.broadcasted_iota(jnp.int32, (BS, VOCAB), 1)).astype(f32)       # [BS, V]
    type_oh = (type_ref[...] ==
               jax.lax.broadcasted_iota(jnp.int32, (BS, TYPE_VOCAB), 1)).astype(f32)  # [BS, 2]
    word_e = jnp.dot(word_oh, we_ref[...], preferred_element_type=f32)                # [BS, H]
    type_e = jnp.dot(type_oh, te_ref[...], preferred_element_type=f32)                # [BS, H]
    pos_e = jnp.tile(pe_ref[0:S, :], (B, 1))              # row b*S+s gets pos[s]      [BS, H]
    h = _ln_rows(word_e + type_e + pos_e, eg_ref[...], eb_ref[...])                   # [BS, H]

    # ---- additive attention-mask bias, shared by all layers/heads ----
    bias = (1.0 - mask_ref[...]) * NEG_INF                 # [B, 1, S]
    bias_all = jnp.concatenate([bias] * NUM_HEADS, axis=0)  # [NH*B, 1, S]

    scale = 1.0 / math.sqrt(HEAD_DIM)
    for l in range(NUM_LAYERS):                            # static unroll, weights stacked [L,...]
        # fused QKV projection: one MXU matmul (bf16 weights pre-cast, f32 accumulate)
        qkv = jnp.dot(h.astype(bf16), wqkv_ref[l],
                      preferred_element_type=f32) + bqkv_ref[l]                       # [BS, 3H]

        # split heads once into a [NH*B, S, Dh] batch; one batched einsum then covers every
        # (batch, head) pair -> single score push + single ctx push per layer.
        q_parts, k_parts, v_parts = [], [], []
        for hd in range(NUM_HEADS):
            lo = hd * HEAD_DIM
            q_parts.append(qkv[:, lo:lo + HEAD_DIM].reshape(B, S, HEAD_DIM))
            k_parts.append(qkv[:, HIDDEN + lo:HIDDEN + lo + HEAD_DIM].reshape(B, S, HEAD_DIM))
            v_parts.append(qkv[:, 2 * HIDDEN + lo:2 * HIDDEN + lo + HEAD_DIM].reshape(B, S, HEAD_DIM))
        q_all = jnp.concatenate(q_parts, axis=0).astype(bf16)   # [NH*B, S, Dh]
        k_all = jnp.concatenate(k_parts, axis=0).astype(bf16)
        v_all = jnp.concatenate(v_parts, axis=0).astype(bf16)

        scores = jnp.einsum('bqd,bkd->bqk', q_all, k_all,
                            preferred_element_type=f32) * scale + bias_all            # [NH*B,S,S]
        scores = scores - jnp.max(scores, axis=-1, keepdims=True)
        p = jnp.exp(scores)
        p = p * pl.reciprocal(jnp.sum(p, axis=-1, keepdims=True), approx=True)
        ctx_all = jnp.einsum('bqk,bkd->bqd', p.astype(bf16), v_all,
                             preferred_element_type=f32)                              # [NH*B,S,Dh]

        # re-assemble heads on the lane axis, then a single output-projection matmul
        ctx = jnp.concatenate(
            [ctx_all[hd * B:(hd + 1) * B].reshape(BS, HEAD_DIM) for hd in range(NUM_HEADS)],
            axis=-1)                                                                   # [BS, H]
        attn = jnp.dot(ctx.astype(bf16), wo_ref[l],
                       preferred_element_type=f32) + bo_ref[l]
        h1 = _ln_rows(attn + h, ln1g_ref[l], ln1b_ref[l])          # residual + LN1 (in VMEM)

        # FFN: GELU(h1 @ W1 + b1) @ W2 + b2, residual + LN2
        inter = jnp.dot(h1.astype(bf16), w1_ref[l],
                        preferred_element_type=f32) + b1_ref[l]
        inter = _gelu(inter)
        ffn = jnp.dot(inter.astype(bf16), w2_ref[l],
                      preferred_element_type=f32) + b2_ref[l]
        h = _ln_rows(ffn + h1, ln2g_ref[l], ln2b_ref[l])

    o_ref[...] = h.astype(o_ref.dtype)                      # single HBM write of the whole output


# ------------------------------ forward pass ----------------------------------
def bert_forward(params, input_ids, token_type_ids, attention_mask):
    B, S = input_ids.shape
    assert S <= MAX_POS

    args = (
        input_ids.reshape(B * S, 1).astype(jnp.int32),         # lane-broadcastable ids
        token_type_ids.reshape(B * S, 1).astype(jnp.int32),
        attention_mask.reshape(B, 1, S).astype(jnp.float32),
        params["word_emb"], params["pos_emb"], params["type_emb"],
        params["emb_ln_g"], params["emb_ln_b"],
        params["wqkv"], params["bqkv"], params["wo"], params["bo"],
        params["ln1_g"], params["ln1_b"], params["w1"], params["b1"],
        params["w2"], params["b2"], params["ln2_g"], params["ln2_b"],
    )

    def full_spec(a):
        zeros = (0,) * a.ndim
        return pl.BlockSpec(a.shape, lambda i, z=zeros: z)

    # TODO(synk): at real BERT sizes (H=768, I=3072, S=512) the stacked weights must be tiled on
    #             the N/intermediate dims with an extra "arbitrary" grid axis and an explicit
    #             vmem_limit_bytes for v7x's 64 MiB VMEM; at toy size everything fits trivially.
    out = pl.pallas_call(
        functools.partial(_fused_bert_kernel, B, S),
        out_shape=jax.ShapeDtypeStruct((B * S, HIDDEN), jnp.float32),
        grid=(1,),                                              # single step: no per-batch grid overhead
        in_specs=[full_spec(a) for a in args],
        out_specs=pl.BlockSpec((B * S, HIDDEN), lambda i: (0, 0)),
        compiler_params=pltpu.CompilerParams(dimension_semantics=("arbitrary",)),
    )(*args)
    return out.reshape(B, S, HIDDEN)                            # free metadata reshape in XLA


# ------------------------- parameter initialization --------------------------
def init_params(key):
    std = 0.02

    def dense(k, fan_in, fan_out):
        return std * jax.random.normal(k, (fan_in, fan_out), jnp.float32)

    keys = jax.random.split(key, 3 + NUM_LAYERS)
    params = {
        "word_emb": std * jax.random.normal(keys[0], (VOCAB, HIDDEN), jnp.float32),
        "pos_emb": std * jax.random.normal(keys[1], (MAX_POS, HIDDEN), jnp.float32),
        "type_emb": std * jax.random.normal(keys[2], (TYPE_VOCAB, HIDDEN), jnp.float32),
        "emb_ln_g": jnp.ones((1, HIDDEN), jnp.float32),
        "emb_ln_b": jnp.zeros((1, HIDDEN), jnp.float32),
    }
    wqkv, bqkv, wo, bo = [], [], [], []
    ln1g, ln1b, w1, b1, w2, b2, ln2g, ln2b = [], [], [], [], [], [], [], []
    for l in range(NUM_LAYERS):
        lk = jax.random.split(keys[3 + l], 6)
        wq, wk, wv = (dense(lk[0], HIDDEN, HIDDEN),
                      dense(lk[1], HIDDEN, HIDDEN),
                      dense(lk[2], HIDDEN, HIDDEN))
        wqkv.append(jnp.concatenate([wq, wk, wv], axis=1))          # packed [H, 3H]
        bqkv.append(jnp.zeros((1, 3 * HIDDEN), jnp.float32))
        wo.append(dense(lk[3], HIDDEN, HIDDEN))
        bo.append(jnp.zeros((1, HIDDEN), jnp.float32))
        ln1g.append(jnp.ones((1, HIDDEN), jnp.float32))
        ln1b.append(jnp.zeros((1, HIDDEN), jnp.float32))
        w1.append(dense(lk[4], HIDDEN, INTERMEDIATE))
        b1.append(jnp.zeros((1, INTERMEDIATE), jnp.float32))
        w2.append(dense(lk[5], INTERMEDIATE, HIDDEN))
        b2.append(jnp.zeros((1, HIDDEN), jnp.float32))
        ln2g.append(jnp.ones((1, HIDDEN), jnp.float32))
        ln2b.append(jnp.zeros((1, HIDDEN), jnp.float32))

    # MXU matmul weights pre-cast to bf16 once (halves weight bytes, removes per-call casts);
    # biases / LayerNorm params / embedding tables stay f32.
    params.update({
        "wqkv": jnp.stack(wqkv).astype(jnp.bfloat16), "bqkv": jnp.stack(bqkv),
        "wo": jnp.stack(wo).astype(jnp.bfloat16),     "bo": jnp.stack(bo),
        "ln1_g": jnp.stack(ln1g), "ln1_b": jnp.stack(ln1b),
        "w1": jnp.stack(w1).astype(jnp.bfloat16),     "b1": jnp.stack(b1),
        "w2": jnp.stack(w2).astype(jnp.bfloat16),     "b2": jnp.stack(b2),
        "ln2_g": jnp.stack(ln2g), "ln2_b": jnp.stack(ln2b),
    })
    return params


class LanguageEmbeddingLayer:
    """Mirror of the PyTorch module: forward(sentences, bert_sent, bert_sent_type, bert_sent_mask)."""
    # TODO(synk): pretrained `hp.bert_path` checkpoint loading has no Pallas equivalent;
    #             weights are deterministic random-initialized with the same architecture.
    def __init__(self, key):
        self.params = init_params(key)

    def __call__(self, sentences, bert_sent, bert_sent_type, bert_sent_mask):
        # `sentences` is ignored, exactly as in the PyTorch forward.
        return bert_forward(self.params, bert_sent, bert_sent_type, bert_sent_mask)


if __name__ == "__main__":
    B, S = 2, 8
    key = jax.random.PRNGKey(0)
    k_ids, k_params = jax.random.split(key)
    bert_sent = jax.random.randint(k_ids, (B, S), 0, VOCAB, dtype=jnp.int32)
    bert_sent_type = jnp.zeros((B, S), jnp.int32).at[:, S // 2:].set(1)
    bert_sent_mask = jnp.ones((B, S), jnp.float32).at[1, 6:].set(0.0)  # pad tail of sample 1
    sentences = None  # unused, as in the reference module

    model = LanguageEmbeddingLayer(k_params)
    out = model(sentences, bert_sent, bert_sent_type, bert_sent_mask)
    out = jax.block_until_ready(out)
    assert out.shape == (B, S, HIDDEN) and out.dtype == jnp.float32
    assert bool(jnp.all(jnp.isfinite(out)))
    print("KERNEL_OK")
</pallas_src>

<mosaic_0001>
module attributes {stable_mosaic.version = 11 : i64} {
  func.func @_fused_bert_kernel(%arg0: i32, %arg1: memref<16x1xi32, #tpu.memory_space<vmem>>, %arg2: memref<16x1xi32, #tpu.memory_space<vmem>>, %arg3: memref<2x1x8xf32, #tpu.memory_space<vmem>>, %arg4: memref<50x32xf32, #tpu.memory_space<vmem>>, %arg5: memref<16x32xf32, #tpu.memory_space<vmem>>, %arg6: memref<2x32xf32, #tpu.memory_space<vmem>>, %arg7: memref<1x32xf32, #tpu.memory_space<vmem>>, %arg8: memref<1x32xf32, #tpu.memory_space<vmem>>, %arg9: memref<2x32x96xbf16, #tpu.memory_space<vmem>>, %arg10: memref<2x1x96xf32, #tpu.memory_space<vmem>>, %arg11: memref<2x32x32xbf16, #tpu.memory_space<vmem>>, %arg12: memref<2x1x32xf32, #tpu.memory_space<vmem>>, %arg13: memref<2x1x32xf32, #tpu.memory_space<vmem>>, %arg14: memref<2x1x32xf32, #tpu.memory_space<vmem>>, %arg15: memref<2x32x64xbf16, #tpu.memory_space<vmem>>, %arg16: memref<2x1x64xf32, #tpu.memory_space<vmem>>, %arg17: memref<2x64x32xbf16, #tpu.memory_space<vmem>>, %arg18: memref<2x1x32xf32, #tpu.memory_space<vmem>>, %arg19: memref<2x1x32xf32, #tpu.memory_space<vmem>>, %arg20: memref<2x1x32xf32, #tpu.memory_space<vmem>>, %arg21: memref<16x32xf32, #tpu.memory_space<vmem>>) attributes {dimension_semantics = [#tpu.dimension_semantics<arbitrary>], iteration_bounds = array<i64: 1>, scalar_prefetch = 0 : i64, scratch_operands = 0 : i64, tpu.core_type = #tpu.core_type<tc>, window_params = [{pipeline_mode = #tpu.pipeline_mode<synchronous>, transform_indices = @transform_0, window_bounds = array<i64: 16, 1>}, {pipeline_mode = #tpu.pipeline_mode<synchronous>, transform_indices = @transform_1, window_bounds = array<i64: 16, 1>}, {pipeline_mode = #tpu.pipeline_mode<synchronous>, transform_indices = @transform_2, window_bounds = array<i64: 2, 1, 8>}, {pipeline_mode = #tpu.pipeline_mode<synchronous>, transform_indices = @transform_3, window_bounds = array<i64: 50, 32>}, {pipeline_mode = #tpu.pipeline_mode<synchronous>, transform_indices = @transform_4, window_bounds = array<i64: 16, 32>}, {pipeline_mode = #tpu.pipeline_mode<synchronous>, transform_indices = @transform_5, window_bounds = array<i64: 2, 32>}, {pipeline_mode = #tpu.pipeline_mode<synchronous>, transform_indices = @transform_6, window_bounds = array<i64: 1, 32>}, {pipeline_mode = #tpu.pipeline_mode<synchronous>, transform_indices = @transform_7, window_bounds = array<i64: 1, 32>}, {pipeline_mode = #tpu.pipeline_mode<synchronous>, transform_indices = @transform_8, window_bounds = array<i64: 2, 32, 96>}, {pipeline_mode = #tpu.pipeline_mode<synchronous>, transform_indices = @transform_9, window_bounds = array<i64: 2, 1, 96>}, {pipeline_mode = #tpu.pipeline_mode<synchronous>, transform_indices = @transform_10, window_bounds = array<i64: 2, 32, 32>}, {pipeline_mode = #tpu.pipeline_mode<synchronous>, transform_indices = @transform_11, window_bounds = array<i64: 2, 1, 32>}, {pipeline_mode = #tpu.pipeline_mode<synchronous>, transform_indices = @transform_12, window_bounds = array<i64: 2, 1, 32>}, {pipeline_mode = #tpu.pipeline_mode<synchronous>, transform_indices = @transform_13, window_bounds = array<i64: 2, 1, 32>}, {pipeline_mode = #tpu.pipeline_mode<synchronous>, transform_indices = @transform_14, window_bounds = array<i64: 2, 32, 64>}, {pipeline_mode = #tpu.pipeline_mode<synchronous>, transform_indices = @transform_15, window_bounds = array<i64: 2, 1, 64>}, {pipeline_mode = #tpu.pipeline_mode<synchronous>, transform_indices = @transform_16, window_bounds = array<i64: 2, 64, 32>}, {pipeline_mode = #tpu.pipeline_mode<synchronous>, transform_indices = @transform_17, window_bounds = array<i64: 2, 1, 32>}, {pipeline_mode = #tpu.pipeline_mode<synchronous>, transform_indices = @transform_18, window_bounds = array<i64: 2, 1, 32>}, {pipeline_mode = #tpu.pipeline_mode<synchronous>, transform_indices = @transform_19, window_bounds = array<i64: 2, 1, 32>}, {pipeline_mode = #tpu.pipeline_mode<synchronous>, transform_indices = @transform_20, window_bounds = array<i64: 16, 32>}]} {
    %c0 = arith.constant 0 : index
    %c0_0 = arith.constant 0 : index
    %0 = vector.load %arg1[%c0, %c0_0] : memref<16x1xi32, #tpu.memory_space<vmem>>, vector<16x1xi32>
    %1 = tpu.iota {dimensions = array<i32: 1>} : vector<16x50xi32>
    %2 = vector.broadcast %0 : vector<16x1xi32> to vector<16x50xi32>
    %3 = arith.cmpi eq, %2, %1 : vector<16x50xi32>
    %4 = arith.extui %3 : vector<16x50xi1> to vector<16x50xi32>
    %5 = arith.sitofp %4 : vector<16x50xi32> to vector<16x50xf32>
    %c0_1 = arith.constant 0 : index
    %c0_2 = arith.constant 0 : index
    %6 = vector.load %arg2[%c0_1, %c0_2] : memref<16x1xi32, #tpu.memory_space<vmem>>, vector<16x1xi32>
    %7 = tpu.iota {dimensions = array<i32: 1>} : vector<16x2xi32>
    %8 = vector.broadcast %6 : vector<16x1xi32> to vector<16x2xi32>
    %9 = arith.cmpi eq, %8, %7 : vector<16x2xi32>
    %10 = arith.extui %9 : vector<16x2xi1> to vector<16x2xi32>
    %11 = arith.sitofp %10 : vector<16x2xi32> to vector<16x2xf32>
    %c0_3 = arith.constant 0 : index
    %c0_4 = arith.constant 0 : index
    %12 = vector.load %arg4[%c0_3, %c0_4] : memref<50x32xf32, #tpu.memory_space<vmem>>, vector<50x32xf32>
    %cst = arith.constant dense<0.000000e+00> : vector<16x32xf32>
    %13 = tpu.matmul %5, %12, %cst {dimension_numbers = #tpu.dot_dimension_numbers<[1], [0], [0], [1], [0, 0, 1, 1], [], []>} : vector<16x50xf32>, vector<50x32xf32>, vector<16x32xf32> -> vector<16x32xf32>
    %c0_5 = arith.constant 0 : index
    %c0_6 = arith.constant 0 : index
    %14 = vector.load %arg6[%c0_5, %c0_6] : memref<2x32xf32, #tpu.memory_space<vmem>>, vector<2x32xf32>
    %cst_7 = arith.constant dense<0.000000e+00> : vector<16x32xf32>
    %15 = tpu.matmul %11, %14, %cst_7 {dimension_numbers = #tpu.dot_dimension_numbers<[1], [0], [0], [1], [0, 0, 1, 1], [], []>} : vector<16x2xf32>, vector<2x32xf32>, vector<16x32xf32> -> vector<16x32xf32>
    %c0_8 = arith.constant 0 : index
    %c0_9 = arith.constant 0 : index
    %16 = vector.load %arg5[%c0_8, %c0_9] : memref<16x32xf32, #tpu.memory_space<vmem>>, vector<8x32xf32>
    %17 = tpu.concatenate %16, %16 in 0 : vector<8x32xf32>, vector<8x32xf32> -> vector<16x32xf32>
    %18 = arith.addf %13, %15 : vector<16x32xf32>
    %19 = arith.addf %18, %17 : vector<16x32xf32>
    %c0_10 = arith.constant 0 : index
    %c0_11 = arith.constant 0 : index
    %20 = vector.load %arg7[%c0_10, %c0_11] : memref<1x32xf32, #tpu.memory_space<vmem>>, vector<1x32xf32>
    %c0_12 = arith.constant 0 : index
    %c0_13 = arith.constant 0 : index
    %21 = vector.load %arg8[%c0_12, %c0_13] : memref<1x32xf32, #tpu.memory_space<vmem>>, vector<1x32xf32>
    %cst_14 = arith.constant dense<0.000000e+00> : vector<16xf32>
    %22 = vector.multi_reduction <add>, %19, %cst_14 [1] : vector<16x32xf32> to vector<16xf32>
    %23 = vector.shape_cast %22 : vector<16xf32> to vector<16x1xf32>
    %cst_15 = arith.constant 3.200000e+01 : f32
    %24 = vector.broadcast %cst_15 : f32 to vector<16x1xf32>
    %25 = arith.divf %23, %24 : vector<16x1xf32>
    %26 = vector.broadcast %25 : vector<16x1xf32> to vector<16x32xf32>
    %27 = arith.subf %19, %26 : vector<16x32xf32>
    %28 = arith.mulf %27, %27 : vector<16x32xf32>
    %cst_16 = arith.constant dense<0.000000e+00> : vector<16xf32>
    %29 = vector.multi_reduction <add>, %28, %cst_16 [1] : vector<16x32xf32> to vector<16xf32>
    %30 = vector.shape_cast %29 : vector<16xf32> to vector<16x1xf32>
    %cst_17 = arith.constant 3.200000e+01 : f32
    %31 = vector.broadcast %cst_17 : f32 to vector<16x1xf32>
    %32 = arith.divf %30, %31 : vector<16x1xf32>
    %33 = vector.broadcast %25 : vector<16x1xf32> to vector<16x32xf32>
    %34 = arith.subf %19, %33 : vector<16x32xf32>
    %cst_18 = arith.constant 9.99999996E-13 : f32
    %35 = vector.broadcast %cst_18 : f32 to vector<16x1xf32>
    %36 = arith.addf %32, %35 : vector<16x1xf32>
    %37 = math.rsqrt %36 : vector<16x1xf32>
    %38 = vector.broadcast %37 : vector<16x1xf32> to vector<16x32xf32>
    %39 = arith.mulf %34, %38 : vector<16x32xf32>
    %40 = vector.broadcast %20 : vector<1x32xf32> to vector<16x32xf32>
    %41 = arith.mulf %39, %40 : vector<16x32xf32>
    %42 = vector.broadcast %21 : vector<1x32xf32> to vector<16x32xf32>
    %43 = arith.addf %41, %42 : vector<16x32xf32>
    %c0_19 = arith.constant 0 : index
    %c0_20 = arith.constant 0 : index
    %c0_21 = arith.constant 0 : index
    %44 = vector.load %arg3[%c0_19, %c0_20, %c0_21] : memref<2x1x8xf32, #tpu.memory_space<vmem>>, vector<2x1x8xf32>
    %cst_22 = arith.constant 1.000000e+00 : f32
    %45 = vector.broadcast %cst_22 : f32 to vector<2x1x8xf32>
    %46 = arith.subf %45, %44 : vector<2x1x8xf32>
    %cst_23 = arith.constant -1.000000e+09 : f32
    %47 = vector.broadcast %cst_23 : f32 to vector<2x1x8xf32>
    %48 = arith.mulf %46, %47 : vector<2x1x8xf32>
    %49 = tpu.concatenate %48, %48 in 0 : vector<2x1x8xf32>, vector<2x1x8xf32> -> vector<4x1x8xf32>
    %50 = arith.truncf %43 : vector<16x32xf32> to vector<16x32xbf16>
    %c0_24 = arith.constant 0 : index
    %c0_25 = arith.constant 0 : index
    %c0_26 = arith.constant 0 : index
    %51 = vector.load %arg9[%c0_24, %c0_25, %c0_26] : memref<2x32x96xbf16, #tpu.memory_space<vmem>>, vector<1x32x96xbf16>
    %52 = vector.shape_cast %51 : vector<1x32x96xbf16> to vector<32x96xbf16>
    %cst_27 = arith.constant dense<0.000000e+00> : vector<16x96xf32>
    %53 = tpu.matmul %50, %52, %cst_27 {dimension_numbers = #tpu.dot_dimension_numbers<[1], [0], [0], [1], [0, 0, 1, 1], [], []>} : vector<16x32xbf16>, vector<32x96xbf16>, vector<16x96xf32> -> vector<16x96xf32>
    %c0_28 = arith.constant 0 : index
    %c0_29 = arith.constant 0 : index
    %c0_30 = arith.constant 0 : index
    %54 = vector.load %arg10[%c0_28, %c0_29, %c0_30] : memref<2x1x96xf32, #tpu.memory_space<vmem>>, vector<1x1x96xf32>
    %55 = vector.shape_cast %54 : vector<1x1x96xf32> to vector<1x96xf32>
    %56 = vector.broadcast %55 : vector<1x96xf32> to vector<16x96xf32>
    %57 = arith.addf %53, %56 : vector<16x96xf32>
    %58 = vector.extract_strided_slice %57 {offsets = [0, 0], sizes = [16, 16], strides = [1, 1]} : vector<16x96xf32> to vector<16x16xf32>
    %59 = vector.shape_cast %58 : vector<16x16xf32> to vector<2x8x16xf32>
    %60 = vector.extract_strided_slice %57 {offsets = [0, 32], sizes = [16, 16], strides = [1, 1]} : vector<16x96xf32> to vector<16x16xf32>
    %61 = vector.shape_cast %60 : vector<16x16xf32> to vector<2x8x16xf32>
    %62 = vector.extract_strided_slice %57 {offsets = [0, 64], sizes = [16, 16], strides = [1, 1]} : vector<16x96xf32> to vector<16x16xf32>
    %63 = vector.shape_cast %62 : vector<16x16xf32> to vector<2x8x16xf32>
    %64 = vector.extract_strided_slice %57 {offsets = [0, 16], sizes = [16, 16], strides = [1, 1]} : vector<16x96xf32> to vector<16x16xf32>
    %65 = vector.shape_cast %64 : vector<16x16xf32> to vector<2x8x16xf32>
    %66 = vector.extract_strided_slice %57 {offsets = [0, 48], sizes = [16, 16], strides = [1, 1]} : vector<16x96xf32> to vector<16x16xf32>
    %67 = vector.shape_cast %66 : vector<16x16xf32> to vector<2x8x16xf32>
    %68 = vector.extract_strided_slice %57 {offsets = [0, 80], sizes = [16, 16], strides = [1, 1]} : vector<16x96xf32> to vector<16x16xf32>
    %69 = vector.shape_cast %68 : vector<16x16xf32> to vector<2x8x16xf32>
    %70 = tpu.concatenate %59, %65 in 0 : vector<2x8x16xf32>, vector<2x8x16xf32> -> vector<4x8x16xf32>
    %71 = arith.truncf %70 : vector<4x8x16xf32> to vector<4x8x16xbf16>
    %72 = tpu.concatenate %61, %67 in 0 : vector<2x8x16xf32>, vector<2x8x16xf32> -> vector<4x8x16xf32>
    %73 = arith.truncf %72 : vector<4x8x16xf32> to vector<4x8x16xbf16>
    %74 = tpu.concatenate %63, %69 in 0 : vector<2x8x16xf32>, vector<2x8x16xf32> -> vector<4x8x16xf32>
    %75 = arith.truncf %74 : vector<4x8x16xf32> to vector<4x8x16xbf16>
    "tpu.trace_start"() <{level = 10 : i32, message = "bqd,bkd->bqk"}> : () -> ()
    %cst_31 = arith.constant dense<0.000000e+00> : vector<4x8x8xf32>
    %76 = tpu.matmul %71, %73, %cst_31 {dimension_numbers = #tpu.dot_dimension_numbers<[2], [2], [1], [1], [0, 0, 0, 1, 1, 1], [0], [0]>} : vector<4x8x16xbf16>, vector<4x8x16xbf16>, vector<4x8x8xf32> -> vector<4x8x8xf32>
    "tpu.trace_stop"() : () -> ()
    %cst_32 = arith.constant 2.500000e-01 : f32
    %77 = vector.broadcast %cst_32 : f32 to vector<4x8x8xf32>
    %78 = arith.mulf %76, %77 : vector<4x8x8xf32>
    %79 = vector.broadcast %49 : vector<4x1x8xf32> to vector<4x8x8xf32>
    %80 = arith.addf %78, %79 : vector<4x8x8xf32>
    %cst_33 = arith.constant dense<0xFF800000> : vector<4x8xf32>
    %81 = vector.multi_reduction <maximumf>, %80, %cst_33 [2] : vector<4x8x8xf32> to vector<4x8xf32>
    %82 = vector.shape_cast %81 : vector<4x8xf32> to vector<4x8x1xf32>
    %83 = vector.broadcast %82 : vector<4x8x1xf32> to vector<4x8x8xf32>
    %84 = arith.subf %80, %83 : vector<4x8x8xf32>
    %85 = math.exp %84 : vector<4x8x8xf32>
    %cst_34 = arith.constant dense<0.000000e+00> : vector<4x8xf32>
    %86 = vector.multi_reduction <add>, %85, %cst_34 [2] : vector<4x8x8xf32> to vector<4x8xf32>
    %87 = vector.shape_cast %86 : vector<4x8xf32> to vector<4x8x1xf32>
    %88 = tpu.reciprocal %87 {approx = true} : vector<4x8x1xf32> -> vector<4x8x1xf32>
    %89 = vector.broadcast %88 : vector<4x8x1xf32> to vector<4x8x8xf32>
    %90 = arith.mulf %85, %89 : vector<4x8x8xf32>
    %91 = arith.truncf %90 : vector<4x8x8xf32> to vector<4x8x8xbf16>
    "tpu.trace_start"() <{level = 10 : i32, message = "bqk,bkd->bqd"}> : () -> ()
    %cst_35 = arith.constant dense<0.000000e+00> : vector<4x8x16xf32>
    %92 = tpu.matmul %91, %75, %cst_35 {dimension_numbers = #tpu.dot_dimension_numbers<[2], [1], [1], [2], [0, 0, 0, 1, 1, 2], [0], [0]>} : vector<4x8x8xbf16>, vector<4x8x16xbf16>, vector<4x8x16xf32> -> vector<4x8x16xf32>
    "tpu.trace_stop"() : () -> ()
    %93 = vector.extract_strided_slice %92 {offsets = [0, 0, 0], sizes = [2, 8, 16], strides = [1, 1, 1]} : vector<4x8x16xf32> to vector<2x8x16xf32>
    %94 = vector.shape_cast %93 : vector<2x8x16xf32> to vector<16x16xf32>
    %95 = vector.extract_strided_slice %92 {offsets = [2, 0, 0], sizes = [2, 8, 16], strides = [1, 1, 1]} : vector<4x8x16xf32> to vector<2x8x16xf32>
    %96 = vector.shape_cast %95 : vector<2x8x16xf32> to vector<16x16xf32>
    %97 = tpu.concatenate %94, %96 in 1 : vector<16x16xf32>, vector<16x16xf32> -> vector<16x32xf32>
    %98 = arith.truncf %97 : vector<16x32xf32> to vector<16x32xbf16>
    %c0_36 = arith.constant 0 : index
    %c0_37 = arith.constant 0 : index
    %c0_38 = arith.constant 0 : index
    %99 = vector.load %arg11[%c0_36, %c0_37, %c0_38] : memref<2x32x32xbf16, #tpu.memory_space<vmem>>, vector<1x32x32xbf16>
    %100 = vector.shape_cast %99 : vector<1x32x32xbf16> to vector<32x32xbf16>
    %cst_39 = arith.constant dense<0.000000e+00> : vector<16x32xf32>
    %101 = tpu.matmul %98, %100, %cst_39 {dimension_numbers = #tpu.dot_dimension_numbers<[1], [0], [0], [1], [0, 0, 1, 1], [], []>} : vector<16x32xbf16>, vector<32x32xbf16>, vector<16x32xf32> -> vector<16x32xf32>
    %c0_40 = arith.constant 0 : index
    %c0_41 = arith.constant 0 : index
    %c0_42 = arith.constant 0 : index
    %102 = vector.load %arg12[%c0_40, %c0_41, %c0_42] : memref<2x1x32xf32, #tpu.memory_space<vmem>>, vector<1x1x32xf32>
    %103 = vector.shape_cast %102 : vector<1x1x32xf32> to vector<1x32xf32>
    %104 = vector.broadcast %103 : vector<1x32xf32> to vector<16x32xf32>
    %105 = arith.addf %101, %104 : vector<16x32xf32>
    %106 = arith.addf %105, %43 : vector<16x32xf32>
    %c0_43 = arith.constant 0 : index
    %c0_44 = arith.constant 0 : index
    %c0_45 = arith.constant 0 : index
    %107 = vector.load %arg13[%c0_43, %c0_44, %c0_45] : memref<2x1x32xf32, #tpu.memory_space<vmem>>, vector<1x1x32xf32>
    %108 = vector.shape_cast %107 : vector<1x1x32xf32> to vector<1x32xf32>
    %c0_46 = arith.constant 0 : index
    %c0_47 = arith.constant 0 : index
    %c0_48 = arith.constant 0 : index
    %109 = vector.load %arg14[%c0_46, %c0_47, %c0_48] : memref<2x1x32xf32, #tpu.memory_space<vmem>>, vector<1x1x32xf32>
    %110 = vector.shape_cast %109 : vector<1x1x32xf32> to vector<1x32xf32>
    %cst_49 = arith.constant dense<0.000000e+00> : vector<16xf32>
    %111 = vector.multi_reduction <add>, %106, %cst_49 [1] : vector<16x32xf32> to vector<16xf32>
    %112 = vector.shape_cast %111 : vector<16xf32> to vector<16x1xf32>
    %cst_50 = arith.constant 3.200000e+01 : f32
    %113 = vector.broadcast %cst_50 : f32 to vector<16x1xf32>
    %114 = arith.divf %112, %113 : vector<16x1xf32>
    %115 = vector.broadcast %114 : vector<16x1xf32> to vector<16x32xf32>
    %116 = arith.subf %106, %115 : vector<16x32xf32>
    %117 = arith.mulf %116, %116 : vector<16x32xf32>
    %cst_51 = arith.constant dense<0.000000e+00> : vector<16xf32>
    %118 = vector.multi_reduction <add>, %117, %cst_51 [1] : vector<16x32xf32> to vector<16xf32>
    %119 = vector.shape_cast %118 : vector<16xf32> to vector<16x1xf32>
    %cst_52 = arith.constant 3.200000e+01 : f32
    %120 = vector.broadcast %cst_52 : f32 to vector<16x1xf32>
    %121 = arith.divf %119, %120 : vector<16x1xf32>
    %122 = vector.broadcast %114 : vector<16x1xf32> to vector<16x32xf32>
    %123 = arith.subf %106, %122 : vector<16x32xf32>
    %cst_53 = arith.constant 9.99999996E-13 : f32
    %124 = vector.broadcast %cst_53 : f32 to vector<16x1xf32>
    %125 = arith.addf %121, %124 : vector<16x1xf32>
    %126 = math.rsqrt %125 : vector<16x1xf32>
    %127 = vector.broadcast %126 : vector<16x1xf32> to vector<16x32xf32>
    %128 = arith.mulf %123, %127 : vector<16x32xf32>
    %129 = vector.broadcast %108 : vector<1x32xf32> to vector<16x32xf32>
    %130 = arith.mulf %128, %129 : vector<16x32xf32>
    %131 = vector.broadcast %110 : vector<1x32xf32> to vector<16x32xf32>
    %132 = arith.addf %130, %131 : vector<16x32xf32>
    %133 = arith.truncf %132 : vector<16x32xf32> to vector<16x32xbf16>
    %c0_54 = arith.constant 0 : index
    %c0_55 = arith.constant 0 : index
    %c0_56 = arith.constant 0 : index
    %134 = vector.load %arg15[%c0_54, %c0_55, %c0_56] : memref<2x32x64xbf16, #tpu.memory_space<vmem>>, vector<1x32x64xbf16>
    %135 = vector.shape_cast %134 : vector<1x32x64xbf16> to vector<32x64xbf16>
    %cst_57 = arith.constant dense<0.000000e+00> : vector<16x64xf32>
    %136 = tpu.matmul %133, %135, %cst_57 {dimension_numbers = #tpu.dot_dimension_numbers<[1], [0], [0], [1], [0, 0, 1, 1], [], []>} : vector<16x32xbf16>, vector<32x64xbf16>, vector<16x64xf32> -> vector<16x64xf32>
    %c0_58 = arith.constant 0 : index
    %c0_59 = arith.constant 0 : index
    %c0_60 = arith.constant 0 : index
    %137 = vector.load %arg16[%c0_58, %c0_59, %c0_60] : memref<2x1x64xf32, #tpu.memory_space<vmem>>, vector<1x1x64xf32>
    %138 = vector.shape_cast %137 : vector<1x1x64xf32> to vector<1x64xf32>
    %139 = vector.broadcast %138 : vector<1x64xf32> to vector<16x64xf32>
    %140 = arith.addf %136, %139 : vector<16x64xf32>
    %cst_61 = arith.constant 5.000000e-01 : f32
    %141 = vector.broadcast %cst_61 : f32 to vector<16x64xf32>
    %142 = arith.mulf %141, %140 : vector<16x64xf32>
    %cst_62 = arith.constant 0.707106769 : f32
    %143 = vector.broadcast %cst_62 : f32 to vector<16x64xf32>
    %144 = arith.mulf %140, %143 : vector<16x64xf32>
    %145 = math.erf %144 : vector<16x64xf32>
    %cst_63 = arith.constant 1.000000e+00 : f32
    %146 = vector.broadcast %cst_63 : f32 to vector<16x64xf32>
    %147 = arith.addf %146, %145 : vector<16x64xf32>
    %148 = arith.mulf %142, %147 : vector<16x64xf32>
    %149 = arith.truncf %148 : vector<16x64xf32> to vector<16x64xbf16>
    %c0_64 = arith.constant 0 : index
    %c0_65 = arith.constant 0 : index
    %c0_66 = arith.constant 0 : index
    %150 = vector.load %arg17[%c0_64, %c0_65, %c0_66] : memref<2x64x32xbf16, #tpu.memory_space<vmem>>, vector<1x64x32xbf16>
    %151 = vector.shape_cast %150 : vector<1x64x32xbf16> to vector<64x32xbf16>
    %cst_67 = arith.constant dense<0.000000e+00> : vector<16x32xf32>
    %152 = tpu.matmul %149, %151, %cst_67 {dimension_numbers = #tpu.dot_dimension_numbers<[1], [0], [0], [1], [0, 0, 1, 1], [], []>} : vector<16x64xbf16>, vector<64x32xbf16>, vector<16x32xf32> -> vector<16x32xf32>
    %c0_68 = arith.constant 0 : index
    %c0_69 = arith.constant 0 : index
    %c0_70 = arith.constant 0 : index
    %153 = vector.load %arg18[%c0_68, %c0_69, %c0_70] : memref<2x1x32xf32, #tpu.memory_space<vmem>>, vector<1x1x32xf32>
    %154 = vector.shape_cast %153 : vector<1x1x32xf32> to vector<1x32xf32>
    %155 = vector.broadcast %154 : vector<1x32xf32> to vector<16x32xf32>
    %156 = arith.addf %152, %155 : vector<16x32xf32>
    %157 = arith.addf %156, %132 : vector<16x32xf32>
    %c0_71 = arith.constant 0 : index
    %c0_72 = arith.constant 0 : index
    %c0_73 = arith.constant 0 : index
    %158 = vector.load %arg19[%c0_71, %c0_72, %c0_73] : memref<2x1x32xf32, #tpu.memory_space<vmem>>, vector<1x1x32xf32>
    %159 = vector.shape_cast %158 : vector<1x1x32xf32> to vector<1x32xf32>
    %c0_74 = arith.constant 0 : index
    %c0_75 = arith.constant 0 : index
    %c0_76 = arith.constant 0 : index
    %160 = vector.load %arg20[%c0_74, %c0_75, %c0_76] : memref<2x1x32xf32, #tpu.memory_space<vmem>>, vector<1x1x32xf32>
    %161 = vector.shape_cast %160 : vector<1x1x32xf32> to vector<1x32xf32>
    %cst_77 = arith.constant dense<0.000000e+00> : vector<16xf32>
    %162 = vector.multi_reduction <add>, %157, %cst_77 [1] : vector<16x32xf32> to vector<16xf32>
    %163 = vector.shape_cast %162 : vector<16xf32> to vector<16x1xf32>
    %cst_78 = arith.constant 3.200000e+01 : f32
    %164 = vector.broadcast %cst_78 : f32 to vector<16x1xf32>
    %165 = arith.divf %163, %164 : vector<16x1xf32>
    %166 = vector.broadcast %165 : vector<16x1xf32> to vector<16x32xf32>
    %167 = arith.subf %157, %166 : vector<16x32xf32>
    %168 = arith.mulf %167, %167 : vector<16x32xf32>
    %cst_79 = arith.constant dense<0.000000e+00> : vector<16xf32>
    %169 = vector.multi_reduction <add>, %168, %cst_79 [1] : vector<16x32xf32> to vector<16xf32>
    %170 = vector.shape_cast %169 : vector<16xf32> to vector<16x1xf32>
    %cst_80 = arith.constant 3.200000e+01 : f32
    %171 = vector.broadcast %cst_80 : f32 to vector<16x1xf32>
    %172 = arith.divf %170, %171 : vector<16x1xf32>
    %173 = vector.broadcast %165 : vector<16x1xf32> to vector<16x32xf32>
    %174 = arith.subf %157, %173 : vector<16x32xf32>
    %cst_81 = arith.constant 9.99999996E-13 : f32
    %175 = vector.broadcast %cst_81 : f32 to vector<16x1xf32>
    %176 = arith.addf %172, %175 : vector<16x1xf32>
    %177 = math.rsqrt %176 : vector<16x1xf32>
    %178 = vector.broadcast %177 : vector<16x1xf32> to vector<16x32xf32>
    %179 = arith.mulf %174, %178 : vector<16x32xf32>
    %180 = vector.broadcast %159 : vector<1x32xf32> to vector<16x32xf32>
    %181 = arith.mulf %179, %180 : vector<16x32xf32>
    %182 = vector.broadcast %161 : vector<1x32xf32> to vector<16x32xf32>
    %183 = arith.addf %181, %182 : vector<16x32xf32>
    %184 = arith.truncf %183 : vector<16x32xf32> to vector<16x32xbf16>
    %c1 = arith.constant 1 : index
    %c0_82 = arith.constant 0 : index
    %c0_83 = arith.constant 0 : index
    %185 = vector.load %arg9[%c1, %c0_82, %c0_83] : memref<2x32x96xbf16, #tpu.memory_space<vmem>>, vector<1x32x96xbf16>
    %186 = vector.shape_cast %185 : vector<1x32x96xbf16> to vector<32x96xbf16>
    %cst_84 = arith.constant dense<0.000000e+00> : vector<16x96xf32>
    %187 = tpu.matmul %184, %186, %cst_84 {dimension_numbers = #tpu.dot_dimension_numbers<[1], [0], [0], [1], [0, 0, 1, 1], [], []>} : vector<16x32xbf16>, vector<32x96xbf16>, vector<16x96xf32> -> vector<16x96xf32>
    %c1_85 = arith.constant 1 : index
    %c0_86 = arith.constant 0 : index
    %c0_87 = arith.constant 0 : index
    %188 = vector.load %arg10[%c1_85, %c0_86, %c0_87] : memref<2x1x96xf32, #tpu.memory_space<vmem>>, vector<1x1x96xf32>
    %189 = vector.shape_cast %188 : vector<1x1x96xf32> to vector<1x96xf32>
    %190 = vector.broadcast %189 : vector<1x96xf32> to vector<16x96xf32>
    %191 = arith.addf %187, %190 : vector<16x96xf32>
    %192 = vector.extract_strided_slice %191 {offsets = [0, 0], sizes = [16, 16], strides = [1, 1]} : vector<16x96xf32> to vector<16x16xf32>
    %193 = vector.shape_cast %192 : vector<16x16xf32> to vector<2x8x16xf32>
    %194 = vector.extract_strided_slice %191 {offsets = [0, 32], sizes = [16, 16], strides = [1, 1]} : vector<16x96xf32> to vector<16x16xf32>
    %195 = vector.shape_cast %194 : vector<16x16xf32> to vector<2x8x16xf32>
    %196 = vector.extract_strided_slice %191 {offsets = [0, 64], sizes = [16, 16], strides = [1, 1]} : vector<16x96xf32> to vector<16x16xf32>
    %197 = vector.shape_cast %196 : vector<16x16xf32> to vector<2x8x16xf32>
    %198 = vector.extract_strided_slice %191 {offsets = [0, 16], sizes = [16, 16], strides = [1, 1]} : vector<16x96xf32> to vector<16x16xf32>
    %199 = vector.shape_cast %198 : vector<16x16xf32> to vector<2x8x16xf32>
    %200 = vector.extract_strided_slice %191 {offsets = [0, 48], sizes = [16, 16], strides = [1, 1]} : vector<16x96xf32> to vector<16x16xf32>
    %201 = vector.shape_cast %200 : vector<16x16xf32> to vector<2x8x16xf32>
    %202 = vector.extract_strided_slice %191 {offsets = [0, 80], sizes = [16, 16], strides = [1, 1]} : vector<16x96xf32> to vector<16x16xf32>
    %203 = vector.shape_cast %202 : vector<16x16xf32> to vector<2x8x16xf32>
    %204 = tpu.concatenate %193, %199 in 0 : vector<2x8x16xf32>, vector<2x8x16xf32> -> vector<4x8x16xf32>
    %205 = arith.truncf %204 : vector<4x8x16xf32> to vector<4x8x16xbf16>
    %206 = tpu.concatenate %195, %201 in 0 : vector<2x8x16xf32>, vector<2x8x16xf32> -> vector<4x8x16xf32>
    %207 = arith.truncf %206 : vector<4x8x16xf32> to vector<4x8x16xbf16>
    %208 = tpu.concatenate %197, %203 in 0 : vector<2x8x16xf32>, vector<2x8x16xf32> -> vector<4x8x16xf32>
    %209 = arith.truncf %208 : vector<4x8x16xf32> to vector<4x8x16xbf16>
    "tpu.trace_start"() <{level = 10 : i32, message = "bqd,bkd->bqk"}> : () -> ()
    %cst_88 = arith.constant dense<0.000000e+00> : vector<4x8x8xf32>
    %210 = tpu.matmul %205, %207, %cst_88 {dimension_numbers = #tpu.dot_dimension_numbers<[2], [2], [1], [1], [0, 0, 0, 1, 1, 1], [0], [0]>} : vector<4x8x16xbf16>, vector<4x8x16xbf16>, vector<4x8x8xf32> -> vector<4x8x8xf32>
    "tpu.trace_stop"() : () -> ()
    %cst_89 = arith.constant 2.500000e-01 : f32
    %211 = vector.broadcast %cst_89 : f32 to vector<4x8x8xf32>
    %212 = arith.mulf %210, %211 : vector<4x8x8xf32>
    %213 = vector.broadcast %49 : vector<4x1x8xf32> to vector<4x8x8xf32>
    %214 = arith.addf %212, %213 : vector<4x8x8xf32>
    %cst_90 = arith.constant dense<0xFF800000> : vector<4x8xf32>
    %215 = vector.multi_reduction <maximumf>, %214, %cst_90 [2] : vector<4x8x8xf32> to vector<4x8xf32>
    %216 = vector.shape_cast %215 : vector<4x8xf32> to vector<4x8x1xf32>
    %217 = vector.broadcast %216 : vector<4x8x1xf32> to vector<4x8x8xf32>
    %218 = arith.subf %214, %217 : vector<4x8x8xf32>
    %219 = math.exp %218 : vector<4x8x8xf32>
    %cst_91 = arith.constant dense<0.000000e+00> : vector<4x8xf32>
    %220 = vector.multi_reduction <add>, %219, %cst_91 [2] : vector<4x8x8xf32> to vector<4x8xf32>
    %221 = vector.shape_cast %220 : vector<4x8xf32> to vector<4x8x1xf32>
    %222 = tpu.reciprocal %221 {approx = true} : vector<4x8x1xf32> -> vector<4x8x1xf32>
    %223 = vector.broadcast %222 : vector<4x8x1xf32> to vector<4x8x8xf32>
    %224 = arith.mulf %219, %223 : vector<4x8x8xf32>
    %225 = arith.truncf %224 : vector<4x8x8xf32> to vector<4x8x8xbf16>
    "tpu.trace_start"() <{level = 10 : i32, message = "bqk,bkd->bqd"}> : () -> ()
    %cst_92 = arith.constant dense<0.000000e+00> : vector<4x8x16xf32>
    %226 = tpu.matmul %225, %209, %cst_92 {dimension_numbers = #tpu.dot_dimension_numbers<[2], [1], [1], [2], [0, 0, 0, 1, 1, 2], [0], [0]>} : vector<4x8x8xbf16>, vector<4x8x16xbf16>, vector<4x8x16xf32> -> vector<4x8x16xf32>
    "tpu.trace_stop"() : () -> ()
    %227 = vector.extract_strided_slice %226 {offsets = [0, 0, 0], sizes = [2, 8, 16], strides = [1, 1, 1]} : vector<4x8x16xf32> to vector<2x8x16xf32>
    %228 = vector.shape_cast %227 : vector<2x8x16xf32> to vector<16x16xf32>
    %229 = vector.extract_strided_slice %226 {offsets = [2, 0, 0], sizes = [2, 8, 16], strides = [1, 1, 1]} : vector<4x8x16xf32> to vector<2x8x16xf32>
    %230 = vector.shape_cast %229 : vector<2x8x16xf32> to vector<16x16xf32>
    %231 = tpu.concatenate %228, %230 in 1 : vector<16x16xf32>, vector<16x16xf32> -> vector<16x32xf32>
    %232 = arith.truncf %231 : vector<16x32xf32> to vector<16x32xbf16>
    %c1_93 = arith.constant 1 : index
    %c0_94 = arith.constant 0 : index
    %c0_95 = arith.constant 0 : index
    %233 = vector.load %arg11[%c1_93, %c0_94, %c0_95] : memref<2x32x32xbf16, #tpu.memory_space<vmem>>, vector<1x32x32xbf16>
    %234 = vector.shape_cast %233 : vector<1x32x32xbf16> to vector<32x32xbf16>
    %cst_96 = arith.constant dense<0.000000e+00> : vector<16x32xf32>
    %235 = tpu.matmul %232, %234, %cst_96 {dimension_numbers = #tpu.dot_dimension_numbers<[1], [0], [0], [1], [0, 0, 1, 1], [], []>} : vector<16x32xbf16>, vector<32x32xbf16>, vector<16x32xf32> -> vector<16x32xf32>
    %c1_97 = arith.constant 1 : index
    %c0_98 = arith.constant 0 : index
    %c0_99 = arith.constant 0 : index
    %236 = vector.load %arg12[%c1_97, %c0_98, %c0_99] : memref<2x1x32xf32, #tpu.memory_space<vmem>>, vector<1x1x32xf32>
    %237 = vector.shape_cast %236 : vector<1x1x32xf32> to vector<1x32xf32>
    %238 = vector.broadcast %237 : vector<1x32xf32> to vector<16x32xf32>
    %239 = arith.addf %235, %238 : vector<16x32xf32>
    %240 = arith.addf %239, %183 : vector<16x32xf32>
    %c1_100 = arith.constant 1 : index
    %c0_101 = arith.constant 0 : index
    %c0_102 = arith.constant 0 : index
    %241 = vector.load %arg13[%c1_100, %c0_101, %c0_102] : memref<2x1x32xf32, #tpu.memory_space<vmem>>, vector<1x1x32xf32>
    %242 = vector.shape_cast %241 : vector<1x1x32xf32> to vector<1x32xf32>
    %c1_103 = arith.constant 1 : index
    %c0_104 = arith.constant 0 : index
    %c0_105 = arith.constant 0 : index
    %243 = vector.load %arg14[%c1_103, %c0_104, %c0_105] : memref<2x1x32xf32, #tpu.memory_space<vmem>>, vector<1x1x32xf32>
    %244 = vector.shape_cast %243 : vector<1x1x32xf32> to vector<1x32xf32>
    %cst_106 = arith.constant dense<0.000000e+00> : vector<16xf32>
    %245 = vector.multi_reduction <add>, %240, %cst_106 [1] : vector<16x32xf32> to vector<16xf32>
    %246 = vector.shape_cast %245 : vector<16xf32> to vector<16x1xf32>
    %cst_107 = arith.constant 3.200000e+01 : f32
    %247 = vector.broadcast %cst_107 : f32 to vector<16x1xf32>
    %248 = arith.divf %246, %247 : vector<16x1xf32>
    %249 = vector.broadcast %248 : vector<16x1xf32> to vector<16x32xf32>
    %250 = arith.subf %240, %249 : vector<16x32xf32>
    %251 = arith.mulf %250, %250 : vector<16x32xf32>
    %cst_108 = arith.constant dense<0.000000e+00> : vector<16xf32>
    %252 = vector.multi_reduction <add>, %251, %cst_108 [1] : vector<16x32xf32> to vector<16xf32>
    %253 = vector.shape_cast %252 : vector<16xf32> to vector<16x1xf32>
    %cst_109 = arith.constant 3.200000e+01 : f32
    %254 = vector.broadcast %cst_109 : f32 to vector<16x1xf32>
    %255 = arith.divf %253, %254 : vector<16x1xf32>
    %256 = vector.broadcast %248 : vector<16x1xf32> to vector<16x32xf32>
    %257 = arith.subf %240, %256 : vector<16x32xf32>
    %cst_110 = arith.constant 9.99999996E-13 : f32
    %258 = vector.broadcast %cst_110 : f32 to vector<16x1xf32>
    %259 = arith.addf %255, %258 : vector<16x1xf32>
    %260 = math.rsqrt %259 : vector<16x1xf32>
    %261 = vector.broadcast %260 : vector<16x1xf32> to vector<16x32xf32>
    %262 = arith.mulf %257, %261 : vector<16x32xf32>
    %263 = vector.broadcast %242 : vector<1x32xf32> to vector<16x32xf32>
    %264 = arith.mulf %262, %263 : vector<16x32xf32>
    %265 = vector.broadcast %244 : vector<1x32xf32> to vector<16x32xf32>
    %266 = arith.addf %264, %265 : vector<16x32xf32>
    %267 = arith.truncf %266 : vector<16x32xf32> to vector<16x32xbf16>
    %c1_111 = arith.constant 1 : index
    %c0_112 = arith.constant 0 : index
    %c0_113 = arith.constant 0 : index
    %268 = vector.load %arg15[%c1_111, %c0_112, %c0_113] : memref<2x32x64xbf16, #tpu.memory_space<vmem>>, vector<1x32x64xbf16>
    %269 = vector.shape_cast %268 : vector<1x32x64xbf16> to vector<32x64xbf16>
    %cst_114 = arith.constant dense<0.000000e+00> : vector<16x64xf32>
    %270 = tpu.matmul %267, %269, %cst_114 {dimension_numbers = #tpu.dot_dimension_numbers<[1], [0], [0], [1], [0, 0, 1, 1], [], []>} : vector<16x32xbf16>, vector<32x64xbf16>, vector<16x64xf32> -> vector<16x64xf32>
    %c1_115 = arith.constant 1 : index
    %c0_116 = arith.constant 0 : index
    %c0_117 = arith.constant 0 : index
    %271 = vector.load %arg16[%c1_115, %c0_116, %c0_117] : memref<2x1x64xf32, #tpu.memory_space<vmem>>, vector<1x1x64xf32>
    %272 = vector.shape_cast %271 : vector<1x1x64xf32> to vector<1x64xf32>
    %273 = vector.broadcast %272 : vector<1x64xf32> to vector<16x64xf32>
    %274 = arith.addf %270, %273 : vector<16x64xf32>
    %cst_118 = arith.constant 5.000000e-01 : f32
    %275 = vector.broadcast %cst_118 : f32 to vector<16x64xf32>
    %276 = arith.mulf %275, %274 : vector<16x64xf32>
    %cst_119 = arith.constant 0.707106769 : f32
    %277 = vector.broadcast %cst_119 : f32 to vector<16x64xf32>
    %278 = arith.mulf %274, %277 : vector<16x64xf32>
    %279 = math.erf %278 : vector<16x64xf32>
    %cst_120 = arith.constant 1.000000e+00 : f32
    %280 = vector.broadcast %cst_120 : f32 to vector<16x64xf32>
    %281 = arith.addf %280, %279 : vector<16x64xf32>
    %282 = arith.mulf %276, %281 : vector<16x64xf32>
    %283 = arith.truncf %282 : vector<16x64xf32> to vector<16x64xbf16>
    %c1_121 = arith.constant 1 : index
    %c0_122 = arith.constant 0 : index
    %c0_123 = arith.constant 0 : index
    %284 = vector.load %arg17[%c1_121, %c0_122, %c0_123] : memref<2x64x32xbf16, #tpu.memory_space<vmem>>, vector<1x64x32xbf16>
    %285 = vector.shape_cast %284 : vector<1x64x32xbf16> to vector<64x32xbf16>
    %cst_124 = arith.constant dense<0.000000e+00> : vector<16x32xf32>
    %286 = tpu.matmul %283, %285, %cst_124 {dimension_numbers = #tpu.dot_dimension_numbers<[1], [0], [0], [1], [0, 0, 1, 1], [], []>} : vector<16x64xbf16>, vector<64x32xbf16>, vector<16x32xf32> -> vector<16x32xf32>
    %c1_125 = arith.constant 1 : index
    %c0_126 = arith.constant 0 : index
    %c0_127 = arith.constant 0 : index
    %287 = vector.load %arg18[%c1_125, %c0_126, %c0_127] : memref<2x1x32xf32, #tpu.memory_space<vmem>>, vector<1x1x32xf32>
    %288 = vector.shape_cast %287 : vector<1x1x32xf32> to vector<1x32xf32>
    %289 = vector.broadcast %288 : vector<1x32xf32> to vector<16x32xf32>
    %290 = arith.addf %286, %289 : vector<16x32xf32>
    %291 = arith.addf %290, %266 : vector<16x32xf32>
    %c1_128 = arith.constant 1 : index
    %c0_129 = arith.constant 0 : index
    %c0_130 = arith.constant 0 : index
    %292 = vector.load %arg19[%c1_128, %c0_129, %c0_130] : memref<2x1x32xf32, #tpu.memory_space<vmem>>, vector<1x1x32xf32>
    %293 = vector.shape_cast %292 : vector<1x1x32xf32> to vector<1x32xf32>
    %c1_131 = arith.constant 1 : index
    %c0_132 = arith.constant 0 : index
    %c0_133 = arith.constant 0 : index
    %294 = vector.load %arg20[%c1_131, %c0_132, %c0_133] : memref<2x1x32xf32, #tpu.memory_space<vmem>>, vector<1x1x32xf32>
    %295 = vector.shape_cast %294 : vector<1x1x32xf32> to vector<1x32xf32>
    %cst_134 = arith.constant dense<0.000000e+00> : vector<16xf32>
    %296 = vector.multi_reduction <add>, %291, %cst_134 [1] : vector<16x32xf32> to vector<16xf32>
    %297 = vector.shape_cast %296 : vector<16xf32> to vector<16x1xf32>
    %cst_135 = arith.constant 3.200000e+01 : f32
    %298 = vector.broadcast %cst_135 : f32 to vector<16x1xf32>
    %299 = arith.divf %297, %298 : vector<16x1xf32>
    %300 = vector.broadcast %299 : vector<16x1xf32> to vector<16x32xf32>
    %301 = arith.subf %291, %300 : vector<16x32xf32>
    %302 = arith.mulf %301, %301 : vector<16x32xf32>
    %cst_136 = arith.constant dense<0.000000e+00> : vector<16xf32>
    %303 = vector.multi_reduction <add>, %302, %cst_136 [1] : vector<16x32xf32> to vector<16xf32>
    %304 = vector.shape_cast %303 : vector<16xf32> to vector<16x1xf32>
    %cst_137 = arith.constant 3.200000e+01 : f32
    %305 = vector.broadcast %cst_137 : f32 to vector<16x1xf32>
    %306 = arith.divf %304, %305 : vector<16x1xf32>
    %307 = vector.broadcast %299 : vector<16x1xf32> to vector<16x32xf32>
    %308 = arith.subf %291, %307 : vector<16x32xf32>
    %cst_138 = arith.constant 9.99999996E-13 : f32
    %309 = vector.broadcast %cst_138 : f32 to vector<16x1xf32>
    %310 = arith.addf %306, %309 : vector<16x1xf32>
    %311 = math.rsqrt %310 : vector<16x1xf32>
    %312 = vector.broadcast %311 : vector<16x1xf32> to vector<16x32xf32>
    %313 = arith.mulf %308, %312 : vector<16x32xf32>
    %314 = vector.broadcast %293 : vector<1x32xf32> to vector<16x32xf32>
    %315 = arith.mulf %313, %314 : vector<16x32xf32>
    %316 = vector.broadcast %295 : vector<1x32xf32> to vector<16x32xf32>
    %317 = arith.addf %315, %316 : vector<16x32xf32>
    %c0_139 = arith.constant 0 : index
    %c0_140 = arith.constant 0 : index
    %318 = vector.load %arg21[%c0_139, %c0_140] : memref<16x32xf32, #tpu.memory_space<vmem>>, vector<16x32xf32>
    tpu.vector_store %arg21[%c0_139, %c0_140], %317 {strides = array<i32>} : memref<16x32xf32, #tpu.memory_space<vmem>>, vector<16x32xf32>,
    return
  }
  func.func @transform_0(%arg0: i32) -> (i32, i32) {
    %c0_i32 = arith.constant 0 : i32
    %c0_i32_0 = arith.constant 0 : i32
    %c0_i32_1 = arith.constant 0 : i32
    return %c0_i32, %c0_i32_0 : i32, i32
  }
  func.func @transform_1(%arg0: i32) -> (i32, i32) {
    %c0_i32 = arith.constant 0 : i32
    %c0_i32_0 = arith.constant 0 : i32
    %c0_i32_1 = arith.constant 0 : i32
    return %c0_i32, %c0_i32_0 : i32, i32
  }
  func.func @transform_2(%arg0: i32) -> (i32, i32, i32) {
    %c0_i32 = arith.constant 0 : i32
    %c0_i32_0 = arith.constant 0 : i32
    %c0_i32_1 = arith.constant 0 : i32
    %c0_i32_2 = arith.constant 0 : i32
    return %c0_i32, %c0_i32_0, %c0_i32_1 : i32, i32, i32
  }
  func.func @transform_3(%arg0: i32) -> (i32, i32) {
    %c0_i32 = arith.constant 0 : i32
    %c0_i32_0 = arith.constant 0 : i32
    %c0_i32_1 = arith.constant 0 : i32
    return %c0_i32, %c0_i32_0 : i32, i32
  }
  func.func @transform_4(%arg0: i32) -> (i32, i32) {
    %c0_i32 = arith.constant 0 : i32
    %c0_i32_0 = arith.constant 0 : i32
    %c0_i32_1 = arith.constant 0 : i32
    return %c0_i32, %c0_i32_0 : i32, i32
  }
  func.func @transform_5(%arg0: i32) -> (i32, i32) {
    %c0_i32 = arith.constant 0 : i32
    %c0_i32_0 = arith.constant 0 : i32
    %c0_i32_1 = arith.constant 0 : i32
    return %c0_i32, %c0_i32_0 : i32, i32
  }
  func.func @transform_6(%arg0: i32) -> (i32, i32) {
    %c0_i32 = arith.constant 0 : i32
    %c0_i32_0 = arith.constant 0 : i32
    %c0_i32_1 = arith.constant 0 : i32
    return %c0_i32, %c0_i32_0 : i32, i32
  }
  func.func @transform_7(%arg0: i32) -> (i32, i32) {
    %c0_i32 = arith.constant 0 : i32
    %c0_i32_0 = arith.constant 0 : i32
    %c0_i32_1 = arith.constant 0 : i32
    return %c0_i32, %c0_i32_0 : i32, i32
  }
  func.func @transform_8(%arg0: i32) -> (i32, i32, i32) {
    %c0_i32 = arith.constant 0 : i32
    %c0_i32_0 = arith.constant 0 : i32
    %c0_i32_1 = arith.constant 0 : i32
    %c0_i32_2 = arith.constant 0 : i32
    return %c0_i32, %c0_i32_0, %c0_i32_1 : i32, i32, i32
  }
  func.func @transform_9(%arg0: i32) -> (i32, i32, i32) {
    %c0_i32 = arith.constant 0 : i32
    %c0_i32_0 = arith.constant 0 : i32
    %c0_i32_1 = arith.constant 0 : i32
    %c0_i32_2 = arith.constant 0 : i32
    return %c0_i32, %c0_i32_0, %c0_i32_1 : i32, i32, i32
  }
  func.func @transform_10(%arg0: i32) -> (i32, i32, i32) {
    %c0_i32 = arith.constant 0 : i32
    %c0_i32_0 = arith.constant 0 : i32
    %c0_i32_1 = arith.constant 0 : i32
    %c0_i32_2 = arith.constant 0 : i32
    return %c0_i32, %c0_i32_0, %c0_i32_1 : i32, i32, i32
  }
  func.func @transform_11(%arg0: i32) -> (i32, i32, i32) {
    %c0_i32 = arith.constant 0 : i32
    %c0_i32_0 = arith.constant 0 : i32
    %c0_i32_1 = arith.constant 0 : i32
    %c0_i32_2 = arith.constant 0 : i32
    return %c0_i32, %c0_i32_0, %c0_i32_1 : i32, i32, i32
  }
  func.func @transform_12(%arg0: i32) -> (i32, i32, i32) {
    %c0_i32 = arith.constant 0 : i32
    %c0_i32_0 = arith.constant 0 : i32
    %c0_i32_1 = arith.constant 0 : i32
    %c0_i32_2 = arith.constant 0 : i32
    return %c0_i32, %c0_i32_0, %c0_i32_1 : i32, i32, i32
  }
  func.func @transform_13(%arg0: i32) -> (i32, i32, i32) {
    %c0_i32 = arith.constant 0 : i32
    %c0_i32_0 = arith.constant 0 : i32
    %c0_i32_1 = arith.constant 0 : i32
    %c0_i32_2 = arith.constant 0 : i32
    return %c0_i32, %c0_i32_0, %c0_i32_1 : i32, i32, i32
  }
  func.func @transform_14(%arg0: i32) -> (i32, i32, i32) {
    %c0_i32 = arith.constant 0 : i32
    %c0_i32_0 = arith.constant 0 : i32
    %c0_i32_1 = arith.constant 0 : i32
    %c0_i32_2 = arith.constant 0 : i32
    return %c0_i32, %c0_i32_0, %c0_i32_1 : i32, i32, i32
  }
  func.func @transform_15(%arg0: i32) -> (i32, i32, i32) {
    %c0_i32 = arith.constant 0 : i32
    %c0_i32_0 = arith.constant 0 : i32
    %c0_i32_1 = arith.constant 0 : i32
    %c0_i32_2 = arith.constant 0 : i32
    return %c0_i32, %c0_i32_0, %c0_i32_1 : i32, i32, i32
  }
  func.func @transform_16(%arg0: i32) -> (i32, i32, i32) {
    %c0_i32 = arith.constant 0 : i32
    %c0_i32_0 = arith.constant 0 : i32
    %c0_i32_1 = arith.constant 0 : i32
    %c0_i32_2 = arith.constant 0 : i32
    return %c0_i32, %c0_i32_0, %c0_i32_1 : i32, i32, i32
  }
  func.func @transform_17(%arg0: i32) -> (i32, i32, i32) {
    %c0_i32 = arith.constant 0 : i32
    %c0_i32_0 = arith.constant 0 : i32
    %c0_i32_1 = arith.constant 0 : i32
    %c0_i32_2 = arith.constant 0 : i32
    return %c0_i32, %c0_i32_0, %c0_i32_1 : i32, i32, i32
  }
  func.func @transform_18(%arg0: i32) -> (i32, i32, i32) {
    %c0_i32 = arith.constant 0 : i32
    %c0_i32_0 = arith.constant 0 : i32
    %c0_i32_1 = arith.constant 0 : i32
    %c0_i32_2 = arith.constant 0 : i32
    return %c0_i32, %c0_i32_0, %c0_i32_1 : i32, i32, i32
  }
  func.func @transform_19(%arg0: i32) -> (i32, i32, i32) {
    %c0_i32 = arith.constant 0 : i32
    %c0_i32_0 = arith.constant 0 : i32
    %c0_i32_1 = arith.constant 0 : i32
    %c0_i32_2 = arith.constant 0 : i32
    return %c0_i32, %c0_i32_0, %c0_i32_1 : i32, i32, i32
  }
  func.func @transform_20(%arg0: i32) -> (i32, i32) {
    %c0_i32 = arith.constant 0 : i32
    %c0_i32_0 = arith.constant 0 : i32
    %c0_i32_1 = arith.constant 0 : i32
    return %c0_i32, %c0_i32_0 : i32, i32
  }
}

</mosaic_0001>

<bundles_post_ra>
// kernel: tpu_custom_call.1
= control target key start
LH: loop header
LB: loop body
LE: loop exit
PB: predicated region body
PF: predicated region fallthrough
CT: control target
= control target key end

     0   :  { %s3128_s0 = inlined_call_operand.vmem [shape: s32[16,1], index: 0, kind: input, shape index: {}]   ;;  %s3129_s1 = inlined_call_operand.vmem [shape: s32[16,1], index: 1, kind: input, shape index: {}]   ;;  %s3130_s2 = inlined_call_operand.vmem [shape: f32[2,1,8], index: 2, kind: input, shape index: {}]   ;;  %s3131_s3 = inlined_call_operand.vmem [shape: f32[50,32], index: 3, kind: input, shape index: {}]   ;;  %s3132_s4 = inlined_call_operand.vmem [shape: f32[16,32], index: 4, kind: input, shape index: {}]   ;;  %s3133_s5 = inlined_call_operand.vmem [shape: f32[2,32], index: 5, kind: input, shape index: {}]   ;;  %s3134_s6 = inlined_call_operand.vmem [shape: f32[1,32], index: 6, kind: input, shape index: {}]   ;;  %s3135_s7 = inlined_call_operand.vmem [shape: f32[1,32], index: 7, kind: input, shape index: {}]   ;;  %s3136_s8 = inlined_call_operand.vmem [shape: bf16[2,32,96], index: 8, kind: input, shape index: {}]   ;;  %s3137_s9 = inlined_call_operand.vmem [shape: f32[2,1,96], index: 9, kind: input, shape index: {}]   ;;  %s3138_s10 = inlined_call_operand.vmem [shape: bf16[2,32,32], index: 10, kind: input, shape index: {}]   ;;  %s3139_s11 = inlined_call_operand.vmem [shape: f32[2,1,32], index: 11, kind: input, shape index: {}]   ;;  %s3140_s12 = inlined_call_operand.vmem [shape: f32[2,1,32], index: 12, kind: input, shape index: {}]   ;;  %s3141_s13 = inlined_call_operand.vmem [shape: f32[2,1,32], index: 13, kind: input, shape index: {}]   ;;  %s3142_s14 = inlined_call_operand.vmem [shape: bf16[2,32,64], index: 14, kind: input, shape index: {}]   ;;  %s3143_s15 = inlined_call_operand.vmem [shape: f32[2,1,64], index: 15, kind: input, shape index: {}]   ;;  %s3144_s16 = inlined_call_operand.vmem [shape: bf16[2,64,32], index: 16, kind: input, shape index: {}]   ;;  %s3145_s17 = inlined_call_operand.vmem [shape: f32[2,1,32], index: 17, kind: input, shape index: {}]   ;;  %s3146_s18 = inlined_call_operand.vmem [shape: f32[2,1,32], index: 18, kind: input, shape index: {}]   ;;  %s3147_s19 = inlined_call_operand.vmem [shape: f32[2,1,32], index: 19, kind: input, shape index: {}]   ;;  %s3148_s20 = inlined_call_operand.hbm [shape: f32[16,32], index: 20, kind: output, shape index: {}]  }
   0x1   :  { %3154 = sst [smem:[#allocation5_spill]] %s3128_s0 }
   0x2   :  { %3155 = sst [smem:[#allocation6_spill]] %s3129_s1 }
   0x3   :  { %3156 = sst [smem:[#allocation7_spill]] %s3130_s2 }
   0x4   :  { %3157 = sst [smem:[#allocation8_spill]] %s3131_s3 }
   0x5   :  { %3158 = sst [smem:[#allocation9_spill]] %s3132_s4 }
   0x6   :  { %3159 = sst [smem:[#allocation10_spill]] %s3143_s15 }
   0x7   :  { %s3160_s23 = sld [smem:[#allocation6_spill]]  ;;  %v2585_v2 = vmov 0   ;;  %v104_v4 = vld [vmem:[%s3133_s5] sm:$0x3]  ;;  %vm112_vm0 = vcmask 1041408   ;;  %v2586_v7 = vmov 0.0  }
   0x8   :  { %s3161_s15 = sld [smem:[#allocation5_spill]]  ;;  %2461 = vset.pattern.permute.xlu0 %v2585_v2  ;;  %2462 = vset.pattern.permute.xlu1 %v2585_v2 }
   0x9   :  { %s3162_s0 = sld [smem:[#allocation8_spill]]  ;;  %2261 = vmatprep.subr.msk.mxu1 %vm112_vm0, %v104_v4  ;;  %2283 = vmatprep.subr.bf16.mxu0 %v2586_v7 }
   0xa   :  { %2262 = vmatpush3.msk.msra.mxu1 %vm112_vm0, %v104_v4 }
   0xd   :  { %v83_v0 = vld [vmem:[%s3160_s23] sm:$0xff]  ;;  %v84_v3 = vld [vmem:[%s3160_s23 + $0x8] sm:$0xff] }
   0xe   :  { %v67_v1 = vld [vmem:[%s3161_s15] sm:$0xff]  ;;  %86 = vperm.xlu0 %2461, %v83_v0   ;;  %v68_v5 = vld [vmem:[%s3161_s15 + $0x8] sm:$0xff] }
   0xf   :  { %72 = vperm.xlu1 %2462, %v67_v1   ;;  %v103_v6 = vld [vmem:[%s3162_s0 + $0x30] sm:$0x3] }
  0x10   :  { %2266 = vmatprep.subr.msk.mxu1 %vm112_vm0, %v103_v6 }
  0x12   :  { %89 = vperm.xlu0 %2461, %v84_v3  }
  0x13   :  { %75 = vperm.xlu1 %2462, %v68_v5  }
  0x14   :  { %25 = vsyncpa [#allocation3], 0  ;;  %v69_v8 = vlaneseq  ;;  %vm105_vm1 = vcmask 15360   ;;  %vm192_vm5 = vcmask 408576   ;;  %v102_v16 = vld [vmem:[%s3162_s0 + $0x28] sm:$0xff]  ;;  %v101_v17 = vld [vmem:[%s3162_s0 + $0x20] sm:$0xff] }
  0x15   :  { %v100_v18 = vld [vmem:[%s3162_s0 + $0x18] sm:$0xff]  ;;  %v99_v19 = vld [vmem:[%s3162_s0 + $0x10] sm:$0xff]  ;;  %v98_v21 = vld [vmem:[%s3162_s0 + $0x8] sm:$0xff]  ;;  %s3163_s29 = sld [smem:[#allocation9_spill]]  ;;  %vm281_vm7 = vcmask 261120   ;;  %vm2587_vm8 = vmmov 0  }
  0x16   :  { %v70_v9 = vand.u32 127, %v69_v8  ;;  %v97_v22 = vld [vmem:[%s3162_s0] sm:$0xff]  ;;  %v2483_v45 = vld [vmem:[%s3136_s8 + $0x8] sm:$0xff]   ;;  %2287 = vmatprep.mubr.msk.bf16.mxu0 %vm2587_vm8, %v2586_v7  ;;  %s2589_s2 = smov 112   ;;  %vm414_vm9 = vcmask 130048   ;;  %s3164_s26 = sld [smem:[#allocation7_spill]] }
  0x17   :  { %2284 = vmatpush3.bf16.msra.mxu0 %v2483_v45  ;;  %v2484_v46 = vld [vmem:[%s3136_s8] sm:$0xff]   ;;  %vm628_vm10 = vcmask 64512   ;;  %s2590_s4 = smov 64   ;;  %vm682_vm11 = vcmask 1043456   ;;  %s2591_s15 = smov 16   ;;  %vm1112_vm12 = vcmask 523264  }
  0x18   :  { %2285 = vmatprep.subr.bf16.mxu0 %v2586_v7  ;;  %v2099_v55 = vld [vmem:[%s3134_s6] ss:$0 sm:$0xff]  ;;  %s3165_s24 = sld [smem:[#allocation10_spill]] }
  0x19   :  { %v2100_v59 = vld [vmem:[%s3135_s7] ss:$0 sm:$0xff]  ;;  %s2588_s7 = smov 96  }
  0x1a   :  { %v2101_v0 = vld [vmem:[%s3137_s9] ss:$0 sm:$0xff] }
  0x1b   :  { %v191_v27 = vld [vmem:[%s3163_s29] sm:$0xff]  ;;  %2286 = vmatpush3.bf16.msra.mxu0 %v2484_v46 }
  0x1c   :  { %2291 = vmatprep.subr.bf16.mxu0 %v2586_v7 }
  0x89   :  { %v87_v10 = vpop.permute.xlu0 %86 }
  0x8a   :  { %vm91_vm2 = vcmp.eq.s32.totalorder %v87_v10, %v70_v9  ;;  %v73_v11 = vpop.permute.xlu1 %72 }
  0x8b   :  { %v2091_v12 = vsel %vm91_vm2, 1.0, %v2586_v7  ;;  %vm77_vm3 = vcmp.eq.s32.totalorder %v73_v11, %v70_v9 }
  0x8c   :  { %2263 = vmatprep.mubr.msk.f32.mxu1 %vm105_vm1, %v2091_v12  ;;  %v2089_v14 = vsel %vm77_vm3, 1.0, %v2586_v7 }
  0x8d   :  { %v90_v13 = vpop.permute.xlu0 %89 }
  0x8e   :  { %vm92_vm4 = vcmp.eq.s32.totalorder %v90_v13, %v70_v9  ;;  %v76_v20 = vpop.permute.xlu1 %75 }
  0x8f   :  { %v2092_v15 = vsel %vm92_vm4, 1.0, %v2586_v7  ;;  %vm78_vm6 = vcmp.eq.s32.totalorder %v76_v20, %v70_v9 }
  0x90   :  { %2264 = vmatmul.mubr.msk.f32.vlgmr.msra.gmra.mxu1 %vm105_vm1, %v2092_v15  ;;  %v2090_v23 = vsel %vm78_vm6, 1.0, %v2586_v7 }
  0x91   :  { %2267 = vmatpush3.msk.msra.mxu1 %vm112_vm0, %v103_v6  ;;  %2280 = vmatprep.mubr.msk.f32.mxu1 %vm192_vm5, %v2089_v14 }
  0x92   :  { %2268 = vmatprep.subr.mxu1 %v102_v16 }
  0x93   :  { %2269 = vmatpush3.msra.mxu1 %v102_v16 }
  0x94   :  { %2270 = vmatprep.subr.mxu1 %v101_v17 }
  0x95   :  { %2271 = vmatpush3.msra.mxu1 %v101_v17 }
  0x96   :  { %2272 = vmatprep.subr.mxu1 %v100_v18 }
  0x97   :  { %2273 = vmatpush3.msra.mxu1 %v100_v18 }
  0x98   :  { %2274 = vmatprep.subr.mxu1 %v99_v19 }
  0x99   :  { %2275 = vmatpush3.msra.mxu1 %v99_v19 }
  0x9a   :  { %2276 = vmatprep.subr.mxu1 %v98_v21 }
  0x9b   :  { %2277 = vmatpush3.msra.mxu1 %v98_v21 }
  0x9c   :  { %2278 = vmatprep.subr.mxu1 %v97_v22 }
  0x9d   :  { %2279 = vmatpush3.msra.mxu1 %v97_v22 }
  0x9e   :  { %2281 = vmatmul.mubr.msk.f32.vlgmr.msra.gmra.mxu1 %vm192_vm5, %v2090_v23  ;;  %2309 = vmatprep.subr.bf16.mxu1 %v2586_v7 }
  0x9f   :  { %2311 = vmatprep.mubr.msk.bf16.mxu1 %vm2587_vm8, %v2586_v7 }
 0x150   :  { %v2265_v24 = vpop.f32.mrf.mxu1 }
 0x152   :  { %v182_v25 = vpop.f32.mrf.mxu1 }
 0x15e   :  { %v2282_v26 = vpop.f32.mrf.mxu1 }
 0x15f   :  { %v274_v28 = vadd.f32 %v2282_v26, %v2265_v24  ;;  %v615_v26 = vshrl.u32 %v69_v8, 7 }
 0x160   :  { %v268_v29 = vpop.f32.mrf.mxu1 }
 0x161   :  { %v269_v30 = vadd.f32 %v268_v29, %v182_v25  ;;  %v278_v31 = vadd.f32 %v274_v28, %v191_v27  ;;  %v325_v25 = vld [vmem:[%s3164_s26] sm:$0x1]  ;;  %v616_v29 = vsub.s32 0, %v615_v26 }
 0x163   :  { %v285_v32 = vsel %vm281_vm7, %v278_v31, 0.0  ;;  %v277_v33 = vadd.f32 %v269_v30, %v191_v27  ;;  %v327_v27 = vsub.f32 1.0, %v325_v25  ;;  %v326_v30 = vld [vmem:[%s3164_s26 + $0x1] sm:$0x1] }
 0x164   :  { %286 = vadd.xlane.f32.xlu1 %v285_v32  ;;  %v328_v32 = vsub.f32 1.0, %v326_v30 }
 0x165   :  { %v282_v34 = vsel %vm281_vm7, %v277_v33, 0.0  ;;  %v329_v28 = vmul.f32 -1e+09, %v327_v27 }
 0x166   :  { %283 = vadd.xlane.f32.xlu0 %v282_v34 }
 0x1ed   :  { %v287_v35 = vpop.xlane.xlu1 %286 }
 0x1ee   :  { %v290_v36 = vmul.f32 0.03125, %v287_v35 }
 0x1ef   :  { %v284_v37 = vpop.xlane.xlu0 %283 }
 0x1f0   :  { %v289_v38 = vmul.f32 0.03125, %v284_v37  ;;  %v292_v39 = vsub.f32 %v278_v31, %v290_v36  ;;  %v2834_v31 = vrot.slane %v329_v28, %v616_v29  ;;  %v330_v37 = vmul.f32 -1e+09, %v328_v32 }
 0x1f2   :  { %v291_v40 = vsub.f32 %v277_v33, %v289_v38  ;;  %v294_v43 = vmul.f32 %v292_v39, %v292_v39 }
 0x1f4   :  { %v293_v41 = vmul.f32 %v291_v40, %v291_v40  ;;  %v298_v44 = vsel %vm281_vm7, %v294_v43, 0.0 }
 0x1f6   :  { %v295_v42 = vsel %vm281_vm7, %v293_v41, 0.0 }
 0x1f7   :  { %296 = vadd.xlane.f32.xlu0 %v295_v42 }
 0x1fb   :  { %299 = vadd.xlane.f32.xlu0 %v298_v44 }
 0x280   :  { %v297_v47 = vpop.xlane.xlu0 %296 }
 0x281   :  { %v301_v48 = vmul.f32 0.03125, %v297_v47 }
 0x283   :  { %v303_v49 = vadd.f32 1e-12, %v301_v48 }
 0x284   :  { %v300_v50 = vpop.xlane.xlu0 %299 }
 0x285   :  { %2503 = vrsqrt.f32 %v303_v49  ;;  %v302_v51 = vmul.f32 0.03125, %v300_v50 }
 0x287   :  { %v304_v52 = vadd.f32 1e-12, %v302_v51 }
 0x289   :  { %2505 = vrsqrt.f32 %v304_v52 }
 0x292   :  { %v2504_v53 = vpop.eup %2503 }
 0x293   :  { %v307_v54 = vmul.f32 %v2504_v53, %v291_v40  ;;  %v2838_v40 = vrot.slane %v330_v37, %v616_v29 }
 0x295   :  { %v315_v58 = vmul.f32 %v2099_v55, %v307_v54 }
 0x296   :  { %v2506_v56 = vpop.eup %2505 }
 0x297   :  { %v308_v57 = vmul.f32 %v2506_v56, %v292_v39  ;;  %v2774_v61 = vadd.f32 %v2100_v59, %v315_v58 }
 0x299   :  { %v316_v60 = vmul.f32 %v2099_v55, %v308_v57 }
 0x29b   :  { %v2776_v62 = vadd.f32 %v2100_v59, %v316_v60 }
 0x29d   :  { %v331_v63 = vpack.c.bf16 %v2776_v62, %v2774_v61 }
 0x29f   :  { %2288 = vmatmul.mubr.msk.bf16.vlgmr.msra.gmra.mxu0 %vm281_vm7, %v331_v63 }
 0x2a0   :  { %2293 = vmatprep.mubr.msk.bf16.mxu0 %vm2587_vm8, %v2586_v7 }
 0x35f   :  { %v392_v1 = vpop.f32.mrf.mxu0 }
 0x360   :  { %v393_v2 = vadd.f32 %v2101_v0, %v392_v1 }
 0x361   :  { %v2289_v3 = vpop.f32.mrf.mxu0 }
 0x362   :  { %v2786_v4 = vpack.c.bf16 %v393_v2, %v393_v2 }
 0x363   :  { %v395_v5 = vpop.f32.mrf.mxu0 }
 0x364   :  { %v396_v6 = vadd.f32 %v2101_v0, %v395_v5  ;;  %412 = vrot.lane.b32.xlu0 %v2786_v4, %s2588_s7 }
 0x365   :  { %v2290_v9 = vpop.f32.mrf.mxu0 }
 0x366   :  { %v2463_v10 = vpack.i.bf16 %v396_v6, %v393_v2  ;;  %v2791_v11 = vpack.c.bf16 %v396_v6, %v396_v6 }
 0x368   :  { %2464 = vrot.lane.b32.xlu1 %v2463_v10, %s2589_s2 }
 0x36c   :  { %462 = vrot.lane.b32.xlu1 %v2791_v11, %s2588_s7 }
 0x3d6   :  { %v413_v12 = vpop.permute.xlu0 %412 }
 0x3d7   :  { %v419_v13 = vsel %vm414_vm9, %v413_v12, 0 }
 0x3d8   :  { %2292 = vmatpush3.bf16.xpose.msra.mxu0 %v419_v13 }
 0x3d9   :  { %2297 = vmatprep.subr.bf16.mxu0 %v2586_v7 }
 0x3da   :  { %v2465_v14 = vpop.permute.xlu1 %2464 }
 0x3db   :  { %v2467_v15 = vunpack.i.h.bf16 %v2465_v14  ;;  %v2466_v16 = vunpack.i.l.bf16 %v2465_v14 }
 0x3dd   :  { %v2797_v17 = vpack.c.bf16 %v2467_v15, %v2467_v15  ;;  %v2799_v18 = vpack.c.bf16 %v2466_v16, %v2466_v16 }
 0x3de   :  { %v463_v19 = vpop.permute.xlu1 %462 }
 0x3df   :  { %v468_v20 = vsel %vm414_vm9, %v463_v19, 0  ;;  %2294 = vmatmul.mubr.msk.bf16.vlgmr.msra.gmra.mxu0 %vm414_vm9, %v2786_v4  ;;  %560 = vrot.lane.b32.xlu0 %v2797_v17, %s2588_s7 }
 0x3e0   :  { %511 = vrot.lane.b32.xlu1 %v2799_v18, %s2588_s7  ;;  %2298 = vmatpush3.bf16.xpose.msra.mxu0 %v468_v20 }
 0x3e1   :  { %2299 = vmatprep.mubr.msk.bf16.mxu0 %vm2587_vm8, %v2586_v7  ;;  %2303 = vmatprep.subr.bf16.mxu0 %v2586_v7 }
 0x3e7   :  { %2300 = vmatmul.mubr.msk.bf16.vlgmr.msra.gmra.mxu0 %vm414_vm9, %v2791_v11 }
 0x3e8   :  { %2305 = vmatprep.mubr.msk.bf16.mxu0 %vm2587_vm8, %v2586_v7 }
 0x451   :  { %v561_v21 = vpop.permute.xlu0 %560 }
 0x452   :  { %v566_v22 = vsel %vm414_vm9, %v561_v21, 0  ;;  %v512_v23 = vpop.permute.xlu1 %511 }
 0x453   :  { %v517_v24 = vsel %vm414_vm9, %v512_v23, 0  ;;  %2310 = vmatpush3.bf16.xpose.msra.mxu1 %v566_v22 }
 0x454   :  { %2304 = vmatpush3.bf16.xpose.msra.mxu0 %v517_v24  ;;  %2321 = vmatprep.subr.bf16.mxu1 %v2586_v7 }
 0x455   :  { %2315 = vmatprep.subr.bf16.mxu0 %v2586_v7 }
 0x45a   :  { %2312 = vmatmul.mubr.msk.bf16.vlgmr.msra.gmra.mxu1 %vm414_vm9, %v2797_v17 }
 0x45b   :  { %2306 = vmatmul.mubr.msk.bf16.vlgmr.msra.gmra.mxu0 %vm414_vm9, %v2799_v18  ;;  %2323 = vmatprep.mubr.msk.bf16.mxu1 %vm2587_vm8, %v2586_v7 }
 0x45c   :  { %2317 = vmatprep.mubr.msk.bf16.mxu0 %vm2587_vm8, %v2586_v7 }
 0x49f   :  { %v455_v33 = vpop.f32.mrf.mxu0 }
 0x4a0   :  { %v608_v34 = vmul.f32 0.25, %v455_v33 }
 0x4a1   :  { %v2295_v35 = vpop.f32.mrf.mxu0 }
 0x4a2   :  { %v624_v36 = vadd.f32 %v2834_v31, %v608_v34 }
 0x4a3   :  { %v458_v38 = vpop.f32.mrf.mxu0 }
 0x4a4   :  { %v629_v8 = vsel %vm628_vm10, %v624_v36, -inf }
 0x4a5   :  { %630 = vmax.xlane.f32.xlu1 %v629_v8  ;;  %v2296_v39 = vpop.f32.mrf.mxu0 }
 0x4a7   :  { %v504_v41 = vpop.f32.mrf.mxu0 }
 0x4a8   :  { %v609_v42 = vmul.f32 0.25, %v504_v41 }
 0x4a9   :  { %v2301_v43 = vpop.f32.mrf.mxu0 }
 0x4aa   :  { %v625_v44 = vadd.f32 %v2838_v40, %v609_v42 }
 0x4ab   :  { %v507_v45 = vpop.f32.mrf.mxu0 }
 0x4ac   :  { %v632_v46 = vsel %vm628_vm10, %v625_v44, -inf }
 0x4ad   :  { %633 = vmax.xlane.f32.xlu0 %v632_v46  ;;  %v2302_v47 = vpop.f32.mrf.mxu0 }
 0x4ae   :  { %v2485_v47 = vld [vmem:[%s3138_s10 + $0x8] sm:$0xff]  }
 0x51a   :  { %v602_v48 = vpop.f32.mrf.mxu1 }
 0x51b   :  { %v553_v49 = vpop.f32.mrf.mxu0  ;;  %v611_v50 = vmul.f32 0.25, %v602_v48 }
 0x51c   :  { %v610_v51 = vmul.f32 0.25, %v553_v49  ;;  %v2313_v52 = vpop.f32.mrf.mxu1 }
 0x51d   :  { %v2307_v53 = vpop.f32.mrf.mxu0  ;;  %v627_v54 = vadd.f32 %v2838_v40, %v611_v50 }
 0x51e   :  { %v605_v55 = vpop.f32.mrf.mxu1  ;;  %v626_v56 = vadd.f32 %v2834_v31, %v610_v51 }
 0x51f   :  { %v556_v57 = vpop.f32.mrf.mxu0  ;;  %v638_v58 = vsel %vm628_vm10, %v627_v54, -inf }
 0x520   :  { %v2314_v59 = vpop.f32.mrf.mxu1  ;;  %639 = vmax.xlane.f32.xlu1 %v638_v58  ;;  %v635_v60 = vsel %vm628_vm10, %v626_v56, -inf }
 0x521   :  { %636 = vmax.xlane.f32.xlu0 %v635_v60  ;;  %v2308_v63 = vpop.f32.mrf.mxu0 }
 0x52e   :  { %v631_v1 = vpop.xlane.xlu1 %630 }
 0x52f   :  { %v641_v3 = vsub.f32 %v624_v36, %v631_v1 }
 0x531   :  { %726 = vrot.lane.b32.xlu1 %v2791_v11, %s2590_s4  ;;  %v645_v6 = vmul.f32 1.442695, %v641_v3 }
 0x536   :  { %v634_v0 = vpop.xlane.xlu0 %633 }
 0x537   :  { %677 = vrot.lane.b32.xlu0 %v2786_v4, %s2590_s4  ;;  %v642_v2 = vsub.f32 %v625_v44, %v634_v0 }
 0x539   :  { %v647_v5 = vmul.f32 1.442695, %v642_v2 }
 0x53b   :  { %2507 = vpow2.f32 %v647_v5 }
 0x53c   :  { %2509 = vpow2.f32 %v645_v6 }
 0x548   :  { %v2508_v9 = vpop.eup %2507 }
 0x549   :  { %v2510_v10 = vpop.eup %2509  ;;  %v656_v12 = vsel %vm628_vm10, %v2508_v9, 0.0 }
 0x54a   :  { %v653_v13 = vsel %vm628_vm10, %v2510_v10, 0.0 }
 0x555   :  { %657 = vadd.xlane.f32.xlu1 %v656_v12 }
 0x556   :  { %654 = vadd.xlane.f32.xlu0 %v653_v13 }
 0x5a9   :  { %v640_v11 = vpop.xlane.xlu1 %639 }
 0x5aa   :  { %v644_v14 = vsub.f32 %v627_v54, %v640_v11  ;;  %v637_v15 = vpop.xlane.xlu0 %636  ;;  %v2113_v11 = vld [vmem:[%s3139_s11] ss:$0 sm:$0xff] }
 0x5ab   :  { %v643_v4 = vsub.f32 %v626_v56, %v637_v15  ;;  %v2486_v56 = vld [vmem:[%s3138_s10] sm:$0xff]  }
 0x5ac   :  { %v651_v16 = vmul.f32 1.442695, %v644_v14 }
 0x5ad   :  { %v649_v19 = vmul.f32 1.442695, %v643_v4  ;;  %v727_v20 = vpop.permute.xlu1 %726 }
 0x5ae   :  { %2511 = vpow2.f32 %v651_v16  ;;  %v732_v21 = vsel %vm682_vm11, %v727_v20, 0  ;;  %v678_v22 = vpop.permute.xlu0 %677 }
 0x5af   :  { %2513 = vpow2.f32 %v649_v19  ;;  %v684_v23 = vsel %vm682_vm11, %v678_v22, 0  ;;  %2322 = vmatpush3.bf16.msra.mxu1 %v732_v21 }
 0x5b0   :  { %2316 = vmatpush3.bf16.msra.mxu0 %v684_v23  ;;  %2333 = vmatprep.subr.bf16.mxu1 %v2586_v7 }
 0x5b1   :  { %2327 = vmatprep.subr.bf16.mxu0 %v2586_v7 }
 0x5bb   :  { %v2512_v24 = vpop.eup %2511 }
 0x5bc   :  { %v2514_v25 = vpop.eup %2513  ;;  %v662_v26 = vsel %vm628_vm10, %v2512_v24, 0.0 }
 0x5bd   :  { %663 = vadd.xlane.f32.xlu1 %v662_v26  ;;  %v659_v27 = vsel %vm628_vm10, %v2514_v25, 0.0 }
 0x5be   :  { %660 = vadd.xlane.f32.xlu0 %v659_v27 }
 0x5ce   :  { %774 = vrot.lane.b32.xlu1 %v2799_v18, %s2590_s4 }
 0x5d4   :  { %822 = vrot.lane.b32.xlu0 %v2797_v17, %s2590_s4 }
 0x5de   :  { %v658_v28 = vpop.xlane.xlu1 %657 }
 0x5df   :  { %2515 = vrcp.f32 %v658_v28  ;;  %v655_v29 = vpop.xlane.xlu0 %654 }
 0x5e0   :  { %2517 = vrcp.f32 %v655_v29 }
 0x5ec   :  { %v2516_v30 = vpop.eup %2515 }
 0x5ed   :  { %v2518_v32 = vpop.eup %2517  ;;  %v670_v33 = vmul.f32 %v2516_v30, %v2508_v9 }
 0x5ee   :  { %v669_v34 = vmul.f32 %v2518_v32, %v2510_v10 }
 0x5ef   :  { %v674_v35 = vpack.c.bf16 %v670_v33, %v670_v33 }
 0x5f0   :  { %v673_v36 = vpack.c.bf16 %v669_v34, %v669_v34 }
 0x5f1   :  { %2324 = vmatmul.mubr.msk.bf16.vlgmr.msra.gmra.mxu1 %vm628_vm10, %v674_v35  ;;  %v2488_v35 = vld [vmem:[%s3142_s14] sm:$0xff]  }
 0x5f2   :  { %2318 = vmatmul.mubr.msk.bf16.vlgmr.msra.gmra.mxu0 %vm628_vm10, %v673_v36  ;;  %2335 = vmatprep.mubr.msk.bf16.mxu1 %vm2587_vm8, %v2586_v7 }
 0x5f3   :  { %2329 = vmatprep.mubr.msk.bf16.mxu0 %vm2587_vm8, %v2586_v7 }
 0x646   :  { %v664_v17 = vpop.xlane.xlu1 %663 }
 0x647   :  { %2519 = vrcp.f32 %v664_v17  ;;  %v661_v18 = vpop.xlane.xlu0 %660 }
 0x648   :  { %2521 = vrcp.f32 %v661_v18 }
 0x64a   :  { %v775_v37 = vpop.permute.xlu1 %774 }
 0x64b   :  { %v780_v38 = vsel %vm682_vm11, %v775_v37, 0  ;;  %v823_v8 = vpop.permute.xlu0 %822 }
 0x64c   :  { %v828_v39 = vsel %vm682_vm11, %v823_v8, 0  ;;  %2328 = vmatpush3.bf16.msra.mxu0 %v780_v38 }
 0x64d   :  { %2334 = vmatpush3.bf16.msra.mxu1 %v828_v39  ;;  %2339 = vmatprep.subr.bf16.mxu0 %v2586_v7 }
 0x64e   :  { %2347 = vmatprep.subr.bf16.mxu1 %v2586_v7 }
 0x654   :  { %v2520_v41 = vpop.eup %2519 }
 0x655   :  { %v2522_v42 = vpop.eup %2521  ;;  %v672_v43 = vmul.f32 %v2520_v41, %v2512_v24 }
 0x656   :  { %v671_v44 = vmul.f32 %v2522_v42, %v2514_v25  ;;  %v2117_v42 = vld [vmem:[%s3140_s12] ss:$0 sm:$0xff] }
 0x657   :  { %v676_v45 = vpack.c.bf16 %v672_v43, %v672_v43 }
 0x658   :  { %v675_v46 = vpack.c.bf16 %v671_v44, %v671_v44 }
 0x659   :  { %2336 = vmatmul.mubr.msk.bf16.vlgmr.msra.gmra.mxu1 %vm628_vm10, %v676_v45 }
 0x65a   :  { %2330 = vmatmul.mubr.msk.bf16.vlgmr.msra.gmra.mxu0 %vm628_vm10, %v675_v46  ;;  %2351 = vmatprep.mubr.msk.bf16.mxu1 %vm2587_vm8, %v2586_v7  ;;  %v2118_v46 = vld [vmem:[%s3141_s13] ss:$0 sm:$0xff] }
 0x65b   :  { %2343 = vmatprep.mubr.msk.bf16.mxu0 %vm2587_vm8, %v2586_v7  ;;  %2340 = vmatpush3.bf16.msra.mxu0 %v2485_v47 }
 0x65c   :  { %2341 = vmatprep.subr.bf16.mxu0 %v2586_v7 }
 0x65f   :  { %2342 = vmatpush3.bf16.msra.mxu0 %v2486_v56 }
 0x660   :  { %2355 = vmatprep.subr.bf16.mxu0 %v2586_v7 }
 0x6b1   :  { %v768_v48 = vpop.f32.mrf.mxu1 }
 0x6b2   :  { %v720_v49 = vpop.f32.mrf.mxu0 }
 0x6b3   :  { %v2325_v50 = vpop.f32.mrf.mxu1 }
 0x6b4   :  { %v2319_v51 = vpop.f32.mrf.mxu0 }
 0x6b5   :  { %v771_v52 = vpop.f32.mrf.mxu1  ;;  %v2489_v51 = vld [vmem:[%s3144_s16 + $0x18] sm:$0xff]  }
 0x6b6   :  { %v723_v53 = vpop.f32.mrf.mxu0  ;;  %v2490_v52 = vld [vmem:[%s3144_s16 + $0x10] sm:$0xff]  }
 0x6b7   :  { %v2326_v54 = vpop.f32.mrf.mxu1  ;;  %v2491_v53 = vld [vmem:[%s3144_s16 + $0x8] sm:$0xff]  }
 0x6b8   :  { %v2320_v55 = vpop.f32.mrf.mxu0  ;;  %v2492_v54 = vld [vmem:[%s3144_s16] sm:$0xff]  }
 0x6b9   :  { %v2119_v55 = vld [vmem:[%s3165_s24] ss:$0 sm:$0xff] }
 0x719   :  { %v864_v57 = vpop.f32.mrf.mxu1 }
 0x71a   :  { %v816_v58 = vpop.f32.mrf.mxu0 }
 0x71b   :  { %v2468_v59 = vpack.i.bf16 %v864_v57, %v816_v58  ;;  %v2337_v60 = vpop.f32.mrf.mxu1 }
 0x71c   :  { %v2331_v63 = vpop.f32.mrf.mxu0 }
 0x71d   :  { %2469 = vrot.lane.b32.xlu1 %v2468_v59, %s2591_s15  ;;  %v867_v0 = vpop.f32.mrf.mxu1 }
 0x71e   :  { %v819_v1 = vpop.f32.mrf.mxu0 }
 0x71f   :  { %v2338_v2 = vpop.f32.mrf.mxu1 }
 0x720   :  { %v2332_v3 = vpop.f32.mrf.mxu0 }
 0x78f   :  { %v2470_v5 = vpop.permute.xlu1 %2469 }
 0x790   :  { %v2472_v6 = vunpack.i.h.bf16 %v2470_v5  ;;  %v2471_v9 = vunpack.i.l.bf16 %v2470_v5 }
 0x792   :  { %v879_v10 = vsel %vm414_vm9, %v768_v48, %v2472_v6  ;;  %v878_v12 = vsel %vm414_vm9, %v720_v49, %v2471_v9 }
 0x793   :  { %v880_v13 = vpack.c.bf16 %v879_v10, %v878_v12 }
 0x795   :  { %2344 = vmatmul.mubr.msk.bf16.vlgmr.msra.gmra.mxu0 %vm281_vm7, %v880_v13 }
 0x796   :  { %2363 = vmatprep.mubr.msk.bf16.mxu0 %vm2587_vm8, %v2586_v7  ;;  %2356 = vmatpush3.bf16.msra.mxu0 %v2489_v51 }
 0x797   :  { %2357 = vmatprep.subr.bf16.mxu0 %v2586_v7 }
 0x79a   :  { %2358 = vmatpush3.bf16.msra.mxu0 %v2490_v52  ;;  %v2136_v52 = vld [vmem:[%s3137_s9 + $0x1] ss:$0 sm:$0xff] }
 0x79b   :  { %2359 = vmatprep.subr.bf16.mxu0 %v2586_v7 }
 0x79e   :  { %2360 = vmatpush3.bf16.msra.mxu0 %v2491_v53 }
 0x79f   :  { %2361 = vmatprep.subr.bf16.mxu0 %v2586_v7 }
 0x7a2   :  { %2362 = vmatpush3.bf16.msra.mxu0 %v2492_v54 }
 0x7a3   :  { %2381 = vmatprep.subr.bf16.mxu0 %v2586_v7 }
 0x855   :  { %v941_v14 = vpop.f32.mrf.mxu0 }
 0x856   :  { %v942_v15 = vadd.f32 %v2113_v11, %v941_v14  ;;  %v2123_v14 = vld [vmem:[%s3145_s17] ss:$0 sm:$0xff] }
 0x857   :  { %v2345_v4 = vpop.f32.mrf.mxu0 }
 0x858   :  { %v948_v16 = vadd.f32 %v942_v15, %v2774_v61 }
 0x859   :  { %v944_v19 = vpop.f32.mrf.mxu0 }
 0x85a   :  { %v945_v20 = vadd.f32 %v2113_v11, %v944_v19  ;;  %v952_v21 = vsel %vm281_vm7, %v948_v16, 0.0 }
 0x85b   :  { %953 = vadd.xlane.f32.xlu0 %v952_v21  ;;  %v2346_v22 = vpop.f32.mrf.mxu0 }
 0x85c   :  { %v949_v23 = vadd.f32 %v945_v20, %v2776_v62  ;;  %v2487_v62 = vld [vmem:[%s3142_s14 + $0x8] sm:$0xff]  }
 0x85d   :  { %2348 = vmatpush3.bf16.msra.mxu1 %v2487_v62 }
 0x85e   :  { %v955_v24 = vsel %vm281_vm7, %v949_v23, 0.0  ;;  %2349 = vmatprep.subr.bf16.mxu1 %v2586_v7 }
 0x85f   :  { %956 = vadd.xlane.f32.xlu1 %v955_v24 }
 0x861   :  { %2350 = vmatpush3.bf16.msra.mxu1 %v2488_v35  ;;  %v2493_v35 = vld [vmem:[%s3136_s8 + $0x18] sm:$0xff]  }
 0x862   :  { %2367 = vmatprep.subr.bf16.mxu1 %v2586_v7 }
 0x8e4   :  { %v954_v25 = vpop.xlane.xlu0 %953 }
 0x8e5   :  { %v958_v26 = vmul.f32 0.03125, %v954_v25 }
 0x8e7   :  { %v960_v27 = vsub.f32 %v948_v16, %v958_v26 }
 0x8e8   :  { %v957_v28 = vpop.xlane.xlu1 %956 }
 0x8e9   :  { %v959_v29 = vmul.f32 0.03125, %v957_v28  ;;  %v962_v30 = vmul.f32 %v960_v27, %v960_v27 }
 0x8eb   :  { %v961_v32 = vsub.f32 %v949_v23, %v959_v29  ;;  %v964_v61 = vsel %vm281_vm7, %v962_v30, 0.0 }
 0x8ec   :  { %965 = vadd.xlane.f32.xlu0 %v964_v61 }
 0x8ed   :  { %v963_v33 = vmul.f32 %v961_v32, %v961_v32 }
 0x8ef   :  { %v967_v34 = vsel %vm281_vm7, %v963_v33, 0.0 }
 0x8f0   :  { %968 = vadd.xlane.f32.xlu0 %v967_v34 }
 0x975   :  { %v966_v36 = vpop.xlane.xlu0 %965 }
 0x976   :  { %v970_v17 = vmul.f32 0.03125, %v966_v36  ;;  %v2494_v36 = vld [vmem:[%s3136_s8 + $0x10] sm:$0xff]  }
 0x978   :  { %v972_v18 = vadd.f32 1e-12, %v970_v17 }
 0x979   :  { %v969_v37 = vpop.xlane.xlu0 %968 }
 0x97a   :  { %2523 = vrsqrt.f32 %v972_v18  ;;  %v971_v38 = vmul.f32 0.03125, %v969_v37 }
 0x97c   :  { %v973_v8 = vadd.f32 1e-12, %v971_v38 }
 0x97e   :  { %2525 = vrsqrt.f32 %v973_v8 }
 0x987   :  { %v2524_v39 = vpop.eup %2523 }
 0x988   :  { %v976_v41 = vmul.f32 %v2524_v39, %v960_v27 }
 0x98a   :  { %v984_v45 = vmul.f32 %v2117_v42, %v976_v41 }
 0x98b   :  { %v2526_v43 = vpop.eup %2525 }
 0x98c   :  { %v977_v44 = vmul.f32 %v2526_v43, %v961_v32  ;;  %v992_v48 = vadd.f32 %v2118_v46, %v984_v45  ;;  %v2129_v43 = vld [vmem:[%s3146_s18] ss:$0 sm:$0xff] }
 0x98e   :  { %v985_v47 = vmul.f32 %v2117_v42, %v977_v44 }
 0x990   :  { %v993_v49 = vadd.f32 %v2118_v46, %v985_v47  ;;  %v2130_v47 = vld [vmem:[%s3147_s19] ss:$0 sm:$0xff] }
 0x992   :  { %v994_v50 = vpack.c.bf16 %v993_v49, %v992_v48 }
 0x994   :  { %2352 = vmatmul.mubr.msk.bf16.vlgmr.msra.gmra.mxu1 %vm281_vm7, %v994_v50 }
 0x995   :  { %2371 = vmatprep.mubr.msk.bf16.mxu1 %vm2587_vm8, %v2586_v7  ;;  %2368 = vmatpush3.bf16.msra.mxu1 %v2493_v35 }
 0x996   :  { %2369 = vmatprep.subr.bf16.mxu1 %v2586_v7 }
 0x999   :  { %2370 = vmatpush3.bf16.msra.mxu1 %v2494_v36 }
 0x99a   :  { %2375 = vmatprep.subr.bf16.mxu1 %v2586_v7 }
 0xa54   :  { %v1055_v56 = vpop.f32.mrf.mxu1 }
 0xa55   :  { %v1056_v57 = vadd.f32 %v2119_v55, %v1055_v56 }
 0xa56   :  { %v2353_v58 = vpop.f32.mrf.mxu1 }
 0xa57   :  { %v1064_v59 = vmul.f32 0.70710677, %v1056_v57  ;;  %v1062_v6 = vmul.f32 0.5, %v1056_v57 }
 0xa58   :  { %v1058_v60 = vpop.f32.mrf.mxu1 }
 0xa59   :  { %2527 = verf.f32 %v1064_v59  ;;  %v1059_v63 = vadd.f32 %v2119_v55, %v1058_v60 }
 0xa5a   :  { %v2354_v0 = vpop.f32.mrf.mxu1 }
 0xa5b   :  { %v1065_v1 = vmul.f32 0.70710677, %v1059_v63  ;;  %v1063_v9 = vmul.f32 0.5, %v1059_v63 }
 0xa5d   :  { %2529 = verf.f32 %v1065_v1 }
 0xa66   :  { %v2528_v2 = vpop.eup %2527 }
 0xa67   :  { %v1068_v3 = vadd.f32 1.0, %v2528_v2 }
 0xa69   :  { %v1070_v12 = vmul.f32 %v1068_v3, %v1062_v6 }
 0xa6a   :  { %v2530_v5 = vpop.eup %2529 }
 0xa6b   :  { %v1069_v10 = vadd.f32 1.0, %v2530_v5 }
 0xa6d   :  { %v1071_v13 = vmul.f32 %v1069_v10, %v1063_v9 }
 0xa6f   :  { %v1072_v11 = vpack.c.bf16 %v1071_v13, %v1070_v12 }
 0xa71   :  { %2364 = vmatmul.mubr.msk.bf16.vlgmr.msra.gmra.mxu0 %vm1112_vm12, %v1072_v11 }
 0xa72   :  { %2383 = vmatprep.mubr.msk.bf16.mxu0 %vm2587_vm8, %v2586_v7 }
 0xb31   :  { %v1150_v15 = vpop.f32.mrf.mxu0 }
 0xb32   :  { %v1151_v4 = vadd.f32 %v2123_v14, %v1150_v15 }
 0xb33   :  { %v2365_v16 = vpop.f32.mrf.mxu0 }
 0xb34   :  { %v1157_v19 = vadd.f32 %v1151_v4, %v992_v48 }
 0xb35   :  { %v1153_v20 = vpop.f32.mrf.mxu0 }
 0xb36   :  { %v1154_v21 = vadd.f32 %v2123_v14, %v1153_v20  ;;  %v1161_v22 = vsel %vm281_vm7, %v1157_v19, 0.0 }
 0xb37   :  { %1162 = vadd.xlane.f32.xlu1 %v1161_v22  ;;  %v2366_v23 = vpop.f32.mrf.mxu0 }
 0xb38   :  { %v1158_v24 = vadd.f32 %v1154_v21, %v993_v49 }
 0xb3a   :  { %v1164_v25 = vsel %vm281_vm7, %v1158_v24, 0.0 }
 0xb3b   :  { %1165 = vadd.xlane.f32.xlu0 %v1164_v25 }
 0xbc0   :  { %v1163_v26 = vpop.xlane.xlu1 %1162 }
 0xbc1   :  { %v1167_v27 = vmul.f32 0.03125, %v1163_v26 }
 0xbc3   :  { %v1169_v28 = vsub.f32 %v1157_v19, %v1167_v27 }
 0xbc4   :  { %v1166_v29 = vpop.xlane.xlu0 %1165 }
 0xbc5   :  { %v1168_v30 = vmul.f32 0.03125, %v1166_v29  ;;  %v1171_v32 = vmul.f32 %v1169_v28, %v1169_v28 }
 0xbc7   :  { %v1170_v61 = vsub.f32 %v1158_v24, %v1168_v30  ;;  %v1173_v33 = vsel %vm281_vm7, %v1171_v32, 0.0 }
 0xbc8   :  { %1174 = vadd.xlane.f32.xlu1 %v1173_v33 }
 0xbc9   :  { %v1172_v34 = vmul.f32 %v1170_v61, %v1170_v61 }
 0xbcb   :  { %v1176_v62 = vsel %vm281_vm7, %v1172_v34, 0.0 }
 0xbcc   :  { %1177 = vadd.xlane.f32.xlu0 %v1176_v62 }
 0xc51   :  { %v1175_v17 = vpop.xlane.xlu1 %1174 }
 0xc52   :  { %v1179_v18 = vmul.f32 0.03125, %v1175_v17 }
 0xc54   :  { %v1181_v37 = vadd.f32 1e-12, %v1179_v18 }
 0xc55   :  { %v1178_v38 = vpop.xlane.xlu0 %1177 }
 0xc56   :  { %2531 = vrsqrt.f32 %v1181_v37  ;;  %v1180_v8 = vmul.f32 0.03125, %v1178_v38 }
 0xc58   :  { %v1182_v39 = vadd.f32 1e-12, %v1180_v8 }
 0xc5a   :  { %2533 = vrsqrt.f32 %v1182_v39 }
 0xc63   :  { %v2532_v41 = vpop.eup %2531 }
 0xc64   :  { %v1185_v42 = vmul.f32 %v2532_v41, %v1169_v28 }
 0xc66   :  { %v1193_v46 = vmul.f32 %v2129_v43, %v1185_v42 }
 0xc67   :  { %v2534_v44 = vpop.eup %2533 }
 0xc68   :  { %v1186_v45 = vmul.f32 %v2534_v44, %v1170_v61  ;;  %v2961_v49 = vadd.f32 %v2130_v47, %v1193_v46 }
 0xc6a   :  { %v1194_v48 = vmul.f32 %v2129_v43, %v1186_v45 }
 0xc6c   :  { %v2963_v50 = vadd.f32 %v2130_v47, %v1194_v48 }
 0xc6e   :  { %v1203_v51 = vpack.c.bf16 %v2963_v50, %v2961_v49 }
 0xc70   :  { %2372 = vmatmul.mubr.msk.bf16.vlgmr.msra.gmra.mxu1 %vm281_vm7, %v1203_v51 }
 0xc71   :  { %2377 = vmatprep.mubr.msk.bf16.mxu1 %vm2587_vm8, %v2586_v7 }
 0xd30   :  { %v1266_v53 = vpop.f32.mrf.mxu1 }
 0xd31   :  { %v1267_v54 = vadd.f32 %v2136_v52, %v1266_v53 }
 0xd32   :  { %v2373_v55 = vpop.f32.mrf.mxu1 }
 0xd33   :  { %v2973_v56 = vpack.c.bf16 %v1267_v54, %v1267_v54 }
 0xd34   :  { %v1269_v57 = vpop.f32.mrf.mxu1 }
 0xd35   :  { %v1270_v58 = vadd.f32 %v2136_v52, %v1269_v57  ;;  %1286 = vrot.lane.b32.xlu0 %v2973_v56, %s2588_s7 }
 0xd36   :  { %v2374_v59 = vpop.f32.mrf.mxu1 }
 0xd37   :  { %v2473_v60 = vpack.i.bf16 %v1270_v58, %v1267_v54  ;;  %v2978_v63 = vpack.c.bf16 %v1270_v58, %v1270_v58 }
 0xd39   :  { %2474 = vrot.lane.b32.xlu1 %v2473_v60, %s2589_s2  ;;  %s2592_s2 = smov [#allocation2]  }
 0xd3d   :  { %1335 = vrot.lane.b32.xlu1 %v2978_v63, %s2588_s7 }
 0xda7   :  { %v1287_v0 = vpop.permute.xlu0 %1286 }
 0xda8   :  { %v1292_v1 = vsel %vm414_vm9, %v1287_v0, 0 }
 0xda9   :  { %2376 = vmatpush3.bf16.xpose.msra.mxu1 %v1292_v1 }
 0xdaa   :  { %2387 = vmatprep.subr.bf16.mxu1 %v2586_v7 }
 0xdab   :  { %v2475_v2 = vpop.permute.xlu1 %2474 }
 0xdac   :  { %v2477_v3 = vunpack.i.h.bf16 %v2475_v2  ;;  %v2476_v5 = vunpack.i.l.bf16 %v2475_v2 }
 0xdae   :  { %v2984_v6 = vpack.c.bf16 %v2477_v3, %v2477_v3  ;;  %v2986_v9 = vpack.c.bf16 %v2476_v5, %v2476_v5 }
 0xdaf   :  { %v1336_v10 = vpop.permute.xlu1 %1335 }
 0xdb0   :  { %v1341_v12 = vsel %vm414_vm9, %v1336_v10, 0  ;;  %2378 = vmatmul.mubr.msk.bf16.vlgmr.msra.gmra.mxu1 %vm414_vm9, %v2973_v56  ;;  %1433 = vrot.lane.b32.xlu0 %v2984_v6, %s2588_s7 }
 0xdb1   :  { %1384 = vrot.lane.b32.xlu1 %v2986_v9, %s2588_s7  ;;  %2382 = vmatpush3.bf16.xpose.msra.mxu0 %v1341_v12 }
 0xdb2   :  { %2393 = vmatprep.subr.bf16.mxu0 %v2586_v7  ;;  %2389 = vmatprep.mubr.msk.bf16.mxu1 %vm2587_vm8, %v2586_v7 }
 0xdb8   :  { %2384 = vmatmul.mubr.msk.bf16.vlgmr.msra.gmra.mxu0 %vm414_vm9, %v2978_v63 }
 0xdb9   :  { %2395 = vmatprep.mubr.msk.bf16.mxu0 %vm2587_vm8, %v2586_v7 }
 0xe22   :  { %v1434_v13 = vpop.permute.xlu0 %1433 }
 0xe23   :  { %v1439_v11 = vsel %vm414_vm9, %v1434_v13, 0  ;;  %v1385_v14 = vpop.permute.xlu1 %1384 }
 0xe24   :  { %v1390_v15 = vsel %vm414_vm9, %v1385_v14, 0  ;;  %2394 = vmatpush3.bf16.xpose.msra.mxu0 %v1439_v11 }
 0xe25   :  { %2388 = vmatpush3.bf16.xpose.msra.mxu1 %v1390_v15  ;;  %2405 = vmatprep.subr.bf16.mxu0 %v2586_v7 }
 0xe26   :  { %2399 = vmatprep.subr.bf16.mxu1 %v2586_v7 }
 0xe2b   :  { %2396 = vmatmul.mubr.msk.bf16.vlgmr.msra.gmra.mxu0 %vm414_vm9, %v2984_v6 }
 0xe2c   :  { %2390 = vmatmul.mubr.msk.bf16.vlgmr.msra.gmra.mxu1 %vm414_vm9, %v2986_v9  ;;  %2407 = vmatprep.mubr.msk.bf16.mxu0 %vm2587_vm8, %v2586_v7 }
 0xe2d   :  { %2401 = vmatprep.mubr.msk.bf16.mxu1 %vm2587_vm8, %v2586_v7 }
 0xe70   :  { %v1328_v4 = vpop.f32.mrf.mxu1 }
 0xe71   :  { %v1481_v16 = vmul.f32 0.25, %v1328_v4 }
 0xe72   :  { %v2379_v19 = vpop.f32.mrf.mxu1 }
 0xe73   :  { %v1485_v20 = vadd.f32 %v1481_v16, %v2834_v31 }
 0xe74   :  { %v1331_v21 = vpop.f32.mrf.mxu1 }
 0xe75   :  { %v1489_v22 = vsel %vm628_vm10, %v1485_v20, -inf }
 0xe76   :  { %1490 = vmax.xlane.f32.xlu1 %v1489_v22  ;;  %v2380_v23 = vpop.f32.mrf.mxu1 }
 0xe78   :  { %v1377_v24 = vpop.f32.mrf.mxu0 }
 0xe79   :  { %v1482_v25 = vmul.f32 0.25, %v1377_v24 }
 0xe7a   :  { %v2385_v26 = vpop.f32.mrf.mxu0 }
 0xe7b   :  { %v1486_v27 = vadd.f32 %v1482_v25, %v2838_v40 }
 0xe7c   :  { %v1380_v28 = vpop.f32.mrf.mxu0 }
 0xe7d   :  { %v1492_v29 = vsel %vm628_vm10, %v1486_v27, -inf  ;;  %v2495_v28 = vld [vmem:[%s3138_s10 + $0x18] sm:$0xff]  }
 0xe7e   :  { %1493 = vmax.xlane.f32.xlu0 %v1492_v29  ;;  %v2386_v30 = vpop.f32.mrf.mxu0 }
 0xeeb   :  { %v1475_v32 = vpop.f32.mrf.mxu0 }
 0xeec   :  { %v1426_v61 = vpop.f32.mrf.mxu1  ;;  %v1484_v33 = vmul.f32 0.25, %v1475_v32 }
 0xeed   :  { %v1483_v34 = vmul.f32 0.25, %v1426_v61  ;;  %v2397_v62 = vpop.f32.mrf.mxu0 }
 0xeee   :  { %v2391_v35 = vpop.f32.mrf.mxu1  ;;  %v1488_v36 = vadd.f32 %v1484_v33, %v2838_v40 }
 0xeef   :  { %v1478_v17 = vpop.f32.mrf.mxu0  ;;  %v1487_v18 = vadd.f32 %v1483_v34, %v2834_v31 }
 0xef0   :  { %v1429_v37 = vpop.f32.mrf.mxu1  ;;  %v1498_v38 = vsel %vm628_vm10, %v1488_v36, -inf }
 0xef1   :  { %v1495_v8 = vsel %vm628_vm10, %v1487_v18, -inf  ;;  %1499 = vmax.xlane.f32.xlu1 %v1498_v38  ;;  %v2398_v39 = vpop.f32.mrf.mxu0 }
 0xef2   :  { %v2392_v41 = vpop.f32.mrf.mxu1  ;;  %1496 = vmax.xlane.f32.xlu0 %v1495_v8 }
 0xeff   :  { %v1491_v40 = vpop.xlane.xlu1 %1490 }
 0xf00   :  { %v1501_v44 = vsub.f32 %v1485_v20, %v1491_v40 }
 0xf02   :  { %1585 = vrot.lane.b32.xlu1 %v2978_v63, %s2590_s4  ;;  %v1505_v45 = vmul.f32 1.442695, %v1501_v44 }
 0xf07   :  { %v1494_v42 = vpop.xlane.xlu0 %1493 }
 0xf08   :  { %1537 = vrot.lane.b32.xlu0 %v2973_v56, %s2590_s4  ;;  %v1502_v43 = vsub.f32 %v1486_v27, %v1494_v42 }
 0xf0a   :  { %v1507_v31 = vmul.f32 1.442695, %v1502_v43 }
 0xf0c   :  { %2535 = vpow2.f32 %v1507_v31 }
 0xf0d   :  { %2537 = vpow2.f32 %v1505_v45 }
 0xf19   :  { %v2536_v46 = vpop.eup %2535 }
 0xf1a   :  { %v2538_v47 = vpop.eup %2537  ;;  %v1516_v48 = vsel %vm628_vm10, %v2536_v46, 0.0 }
 0xf1b   :  { %v1513_v51 = vsel %vm628_vm10, %v2538_v47, 0.0 }
 0xf26   :  { %1517 = vadd.xlane.f32.xlu1 %v1516_v48  ;;  %v2153_v48 = vld [vmem:[%s3139_s11 + $0x1] ss:$0 sm:$0xff] }
 0xf27   :  { %1514 = vadd.xlane.f32.xlu0 %v1513_v51 }
 0xf7a   :  { %v1500_v52 = vpop.xlane.xlu1 %1499 }
 0xf7b   :  { %v1497_v53 = vpop.xlane.xlu0 %1496  ;;  %v1504_v54 = vsub.f32 %v1488_v36, %v1500_v52  ;;  %v2496_v36 = vld [vmem:[%s3138_s10 + $0x10] sm:$0xff]  }
 0xf7c   :  { %v1503_v55 = vsub.f32 %v1487_v18, %v1497_v53 }
 0xf7d   :  { %v1511_v56 = vmul.f32 1.442695, %v1504_v54 }
 0xf7e   :  { %v1509_v57 = vmul.f32 1.442695, %v1503_v55  ;;  %v1586_v58 = vpop.permute.xlu1 %1585 }
 0xf7f   :  { %2539 = vpow2.f32 %v1511_v56  ;;  %v1538_v59 = vpop.permute.xlu0 %1537  ;;  %v1591_v60 = vsel %vm682_vm11, %v1586_v58, 0 }
 0xf80   :  { %2541 = vpow2.f32 %v1509_v57  ;;  %v1543_v63 = vsel %vm682_vm11, %v1538_v59, 0  ;;  %2406 = vmatpush3.bf16.msra.mxu0 %v1591_v60 }
 0xf81   :  { %2400 = vmatpush3.bf16.msra.mxu1 %v1543_v63  ;;  %2417 = vmatprep.subr.bf16.mxu0 %v2586_v7 }
 0xf82   :  { %2411 = vmatprep.subr.bf16.mxu1 %v2586_v7 }
 0xf8c   :  { %v2540_v0 = vpop.eup %2539 }
 0xf8d   :  { %v2542_v1 = vpop.eup %2541  ;;  %v1522_v2 = vsel %vm628_vm10, %v2540_v0, 0.0 }
 0xf8e   :  { %v1519_v3 = vsel %vm628_vm10, %v2542_v1, 0.0  ;;  %1523 = vadd.xlane.f32.xlu1 %v1522_v2 }
 0xf8f   :  { %1520 = vadd.xlane.f32.xlu0 %v1519_v3 }
 0xf9f   :  { %1633 = vrot.lane.b32.xlu1 %v2986_v9, %s2590_s4 }
 0xfa5   :  { %1681 = vrot.lane.b32.xlu0 %v2984_v6, %s2590_s4  ;;  %s2078_s4 = sshll.u32 %s2592_s2, 4  ;;  %s2079_s4 = int_to_ptr.vmem [resolvable:$true] %s2078_s4 }
 0xfa6   :  { %s2563_s10 = scalar_lea.vmem %s2079_s4, 256  ;;  %p2568_p1 = scmp.lt.s32.totalorder %s2079_s4, %s2079_s4 }
 0xfa7   :  { %p2564_p0 = scmp.ne.s32.totalorder %s2079_s4, %s2563_s10  ;;  %p2569_p2 = scmp.lt.s32.totalorder %s2563_s10, %s2563_s10 }
 0xfa9   :  { %p2570_p3 = por %p2569_p2, %p2568_p1 }
 0xfab   :  { %p2571_p4 = pnand %p2570_p3, %p2564_p0 }
 0xfaf   :  { %v1518_v5 = vpop.xlane.xlu1 %1517 }
 0xfb0   :  { %v1515_v10 = vpop.xlane.xlu0 %1514  ;;  %2543 = vrcp.f32 %v1518_v5 }
 0xfb1   :  { %2545 = vrcp.f32 %v1515_v10 }
 0xfbd   :  { %v2544_v12 = vpop.eup %2543 }
 0xfbe   :  { %v2546_v13 = vpop.eup %2545  ;;  %v1530_v11 = vmul.f32 %v2544_v12, %v2536_v46 }
 0xfbf   :  { %v1529_v14 = vmul.f32 %v2546_v13, %v2538_v47 }
 0xfc0   :  { %v1534_v15 = vpack.c.bf16 %v1530_v11, %v1530_v11  ;;  %v2498_v11 = vld [vmem:[%s3142_s14 + $0x10] sm:$0xff]  }
 0xfc1   :  { %v1533_v4 = vpack.c.bf16 %v1529_v14, %v1529_v14 }
 0xfc2   :  { %2408 = vmatmul.mubr.msk.bf16.vlgmr.msra.gmra.mxu0 %vm628_vm10, %v1534_v15 }
 0xfc3   :  { %2402 = vmatmul.mubr.msk.bf16.vlgmr.msra.gmra.mxu1 %vm628_vm10, %v1533_v4  ;;  %2419 = vmatprep.mubr.msk.bf16.mxu0 %vm2587_vm8, %v2586_v7 }
 0xfc4   :  { %2413 = vmatprep.mubr.msk.bf16.mxu1 %vm2587_vm8, %v2586_v7 }
0x1017   :  { %v1524_v6 = vpop.xlane.xlu1 %1523 }
0x1018   :  { %v1521_v9 = vpop.xlane.xlu0 %1520  ;;  %2547 = vrcp.f32 %v1524_v6 }
0x1019   :  { %2549 = vrcp.f32 %v1521_v9 }
0x101b   :  { %v1634_v16 = vpop.permute.xlu1 %1633 }
0x101c   :  { %v1682_v19 = vpop.permute.xlu0 %1681  ;;  %v1639_v20 = vsel %vm682_vm11, %v1634_v16, 0 }
0x101d   :  { %v1687_v21 = vsel %vm682_vm11, %v1682_v19, 0  ;;  %2412 = vmatpush3.bf16.msra.mxu1 %v1639_v20 }
0x101e   :  { %2418 = vmatpush3.bf16.msra.mxu0 %v1687_v21  ;;  %2423 = vmatprep.subr.bf16.mxu1 %v2586_v7  ;;  %v2159_v21 = vld [vmem:[%s3140_s12 + $0x1] ss:$0 sm:$0xff] }
0x101f   :  { %2431 = vmatprep.subr.bf16.mxu0 %v2586_v7 }
0x1025   :  { %v2548_v22 = vpop.eup %2547 }
0x1026   :  { %v2550_v23 = vpop.eup %2549  ;;  %v1532_v24 = vmul.f32 %v2548_v22, %v2540_v0 }
0x1027   :  { %v1531_v25 = vmul.f32 %v2550_v23, %v2542_v1 }
0x1028   :  { %v1536_v26 = vpack.c.bf16 %v1532_v24, %v1532_v24 }
0x1029   :  { %v1535_v27 = vpack.c.bf16 %v1531_v25, %v1531_v25  ;;  %v2160_v25 = vld [vmem:[%s3141_s13 + $0x1] ss:$0 sm:$0xff] }
0x102a   :  { %2420 = vmatmul.mubr.msk.bf16.vlgmr.msra.gmra.mxu0 %vm628_vm10, %v1536_v26 }
0x102b   :  { %2414 = vmatmul.mubr.msk.bf16.vlgmr.msra.gmra.mxu1 %vm628_vm10, %v1535_v27  ;;  %2435 = vmatprep.mubr.msk.bf16.mxu0 %vm2587_vm8, %v2586_v7 }
0x102c   :  { %2427 = vmatprep.mubr.msk.bf16.mxu1 %vm2587_vm8, %v2586_v7  ;;  %2424 = vmatpush3.bf16.msra.mxu1 %v2495_v28 }
0x102d   :  { %2425 = vmatprep.subr.bf16.mxu1 %v2586_v7 }
0x1030   :  { %2426 = vmatpush3.bf16.msra.mxu1 %v2496_v36 }
0x1031   :  { %2439 = vmatprep.subr.bf16.mxu1 %v2586_v7 }
0x1082   :  { %v1627_v29 = vpop.f32.mrf.mxu0 }
0x1083   :  { %v1579_v30 = vpop.f32.mrf.mxu1 }
0x1084   :  { %v2409_v32 = vpop.f32.mrf.mxu0 }
0x1085   :  { %v2403_v61 = vpop.f32.mrf.mxu1  ;;  %v2500_v32 = vld [vmem:[%s3144_s16 + $0x30] sm:$0xff]  }
0x1086   :  { %v1630_v33 = vpop.f32.mrf.mxu0  ;;  %v2501_v61 = vld [vmem:[%s3144_s16 + $0x28] sm:$0xff]  }
0x1087   :  { %v1582_v34 = vpop.f32.mrf.mxu1  ;;  %v2502_v33 = vld [vmem:[%s3144_s16 + $0x20] sm:$0xff]  }
0x1088   :  { %v2410_v62 = vpop.f32.mrf.mxu0  ;;  %v2166_v34 = vld [vmem:[%s3165_s24 + $0x1] ss:$0 sm:$0xff] }
0x1089   :  { %v2404_v35 = vpop.f32.mrf.mxu1 }
0x10ea   :  { %v1723_v17 = vpop.f32.mrf.mxu0 }
0x10eb   :  { %v1675_v18 = vpop.f32.mrf.mxu1 }
0x10ec   :  { %v2478_v37 = vpack.i.bf16 %v1723_v17, %v1675_v18  ;;  %v2421_v38 = vpop.f32.mrf.mxu0 }
0x10ed   :  { %v2415_v8 = vpop.f32.mrf.mxu1 }
0x10ee   :  { %2479 = vrot.lane.b32.xlu1 %v2478_v37, %s2591_s15  ;;  %v1726_v39 = vpop.f32.mrf.mxu0 }
0x10ef   :  { %v1678_v41 = vpop.f32.mrf.mxu1 }
0x10f0   :  { %v2422_v42 = vpop.f32.mrf.mxu0 }
0x10f1   :  { %v2416_v40 = vpop.f32.mrf.mxu1 }
0x1160   :  { %v2480_v43 = vpop.permute.xlu1 %2479 }
0x1161   :  { %v2482_v44 = vunpack.i.h.bf16 %v2480_v43  ;;  %v2481_v31 = vunpack.i.l.bf16 %v2480_v43 }
0x1163   :  { %v1738_v45 = vsel %vm414_vm9, %v1627_v29, %v2482_v44  ;;  %v1737_v46 = vsel %vm414_vm9, %v1579_v30, %v2481_v31  ;;  %v2499_v30 = vld [vmem:[%s3144_s16 + $0x38] sm:$0xff]  }
0x1164   :  { %v1739_v47 = vpack.c.bf16 %v1738_v45, %v1737_v46  ;;  %v2179_v46 = vld [vmem:[%s3145_s17 + $0x1] ss:$0 sm:$0xff] }
0x1166   :  { %2428 = vmatmul.mubr.msk.bf16.vlgmr.msra.gmra.mxu1 %vm281_vm7, %v1739_v47 }
0x1167   :  { %2447 = vmatprep.mubr.msk.bf16.mxu1 %vm2587_vm8, %v2586_v7  ;;  %2440 = vmatpush3.bf16.msra.mxu1 %v2499_v30 }
0x1168   :  { %2441 = vmatprep.subr.bf16.mxu1 %v2586_v7 }
0x116b   :  { %2442 = vmatpush3.bf16.msra.mxu1 %v2500_v32 }
0x116c   :  { %2443 = vmatprep.subr.bf16.mxu1 %v2586_v7 }
0x116f   :  { %2444 = vmatpush3.bf16.msra.mxu1 %v2501_v61 }
0x1170   :  { %2445 = vmatprep.subr.bf16.mxu1 %v2586_v7 }
0x1173   :  { %2446 = vmatpush3.bf16.msra.mxu1 %v2502_v33 }
0x1226   :  { %v1802_v51 = vpop.f32.mrf.mxu1 }
0x1227   :  { %v1803_v52 = vadd.f32 %v2153_v48, %v1802_v51 }
0x1228   :  { %v2429_v53 = vpop.f32.mrf.mxu1 }
0x1229   :  { %v1809_v54 = vadd.f32 %v1803_v52, %v2961_v49 }
0x122a   :  { %v1805_v55 = vpop.f32.mrf.mxu1 }
0x122b   :  { %v1806_v56 = vadd.f32 %v2153_v48, %v1805_v55  ;;  %v1815_v57 = vsel %vm281_vm7, %v1809_v54, 0.0 }
0x122c   :  { %1816 = vadd.xlane.f32.xlu0 %v1815_v57  ;;  %v2430_v58 = vpop.f32.mrf.mxu1 }
0x122d   :  { %v1810_v59 = vadd.f32 %v1806_v56, %v2963_v50  ;;  %v2497_v50 = vld [vmem:[%s3142_s14 + $0x18] sm:$0xff]  }
0x122e   :  { %2432 = vmatpush3.bf16.msra.mxu0 %v2497_v50 }
0x122f   :  { %v1818_v60 = vsel %vm281_vm7, %v1810_v59, 0.0  ;;  %2433 = vmatprep.subr.bf16.mxu0 %v2586_v7 }
0x1230   :  { %1819 = vadd.xlane.f32.xlu1 %v1818_v60 }
0x1232   :  { %2434 = vmatpush3.bf16.msra.mxu0 %v2498_v11 }
0x12b5   :  { %v1817_v63 = vpop.xlane.xlu0 %1816 }
0x12b6   :  { %v1821_v0 = vmul.f32 0.03125, %v1817_v63 }
0x12b8   :  { %v1823_v1 = vsub.f32 %v1809_v54, %v1821_v0 }
0x12b9   :  { %v1820_v2 = vpop.xlane.xlu1 %1819 }
0x12ba   :  { %v1822_v3 = vmul.f32 0.03125, %v1820_v2  ;;  %v1825_v5 = vmul.f32 %v1823_v1, %v1823_v1 }
0x12bc   :  { %v1824_v10 = vsub.f32 %v1810_v59, %v1822_v3  ;;  %v1827_v49 = vsel %vm281_vm7, %v1825_v5, 0.0 }
0x12bd   :  { %1828 = vadd.xlane.f32.xlu0 %v1827_v49 }
0x12be   :  { %v1826_v12 = vmul.f32 %v1824_v10, %v1824_v10 }
0x12c0   :  { %v1830_v13 = vsel %vm281_vm7, %v1826_v12, 0.0 }
0x12c1   :  { %1831 = vadd.xlane.f32.xlu0 %v1830_v13 }
0x1346   :  { %v1829_v14 = vpop.xlane.xlu0 %1828 }
0x1347   :  { %v1833_v15 = vmul.f32 0.03125, %v1829_v14 }
0x1349   :  { %v1835_v4 = vadd.f32 1e-12, %v1833_v15 }
0x134a   :  { %v1832_v6 = vpop.xlane.xlu0 %1831 }
0x134b   :  { %2551 = vrsqrt.f32 %v1835_v4  ;;  %v1834_v9 = vmul.f32 0.03125, %v1832_v6  ;;  %v2187_v6 = vld [vmem:[%s3146_s18 + $0x1] ss:$0 sm:$0xff] }
0x134d   :  { %v1836_v16 = vadd.f32 1e-12, %v1834_v9 }
0x134f   :  { %2553 = vrsqrt.f32 %v1836_v16  ;;  %v2188_v16 = vld [vmem:[%s3147_s19 + $0x1] ss:$0 sm:$0xff] }
0x1358   :  { %v2552_v19 = vpop.eup %2551 }
0x1359   :  { %v1839_v20 = vmul.f32 %v2552_v19, %v1823_v1 }
0x135b   :  { %v1847_v24 = vmul.f32 %v2159_v21, %v1839_v20 }
0x135c   :  { %v2554_v22 = vpop.eup %2553 }
0x135d   :  { %v1840_v23 = vmul.f32 %v2554_v22, %v1824_v10  ;;  %v1855_v27 = vadd.f32 %v2160_v25, %v1847_v24 }
0x135f   :  { %v1848_v26 = vmul.f32 %v2159_v21, %v1840_v23 }
0x1361   :  { %v1856_v28 = vadd.f32 %v2160_v25, %v1848_v26 }
0x1363   :  { %v1857_v29 = vpack.c.bf16 %v1856_v28, %v1855_v27 }
0x1365   :  { %2436 = vmatmul.mubr.msk.bf16.vlgmr.msra.gmra.mxu0 %vm281_vm7, %v1857_v29 }
0x1425   :  { %v1920_v62 = vpop.f32.mrf.mxu0 }
0x1426   :  { %v1921_v35 = vadd.f32 %v2166_v34, %v1920_v62 }
0x1427   :  { %v2437_v36 = vpop.f32.mrf.mxu0 }
0x1428   :  { %v1929_v17 = vmul.f32 0.70710677, %v1921_v35  ;;  %v1927_v42 = vmul.f32 0.5, %v1921_v35 }
0x1429   :  { %v1923_v18 = vpop.f32.mrf.mxu0 }
0x142a   :  { %2555 = verf.f32 %v1929_v17  ;;  %v1924_v37 = vadd.f32 %v2166_v34, %v1923_v18 }
0x142b   :  { %v2438_v38 = vpop.f32.mrf.mxu0 }
0x142c   :  { %v1930_v8 = vmul.f32 0.70710677, %v1924_v37  ;;  %v1928_v40 = vmul.f32 0.5, %v1924_v37 }
0x142e   :  { %2557 = verf.f32 %v1930_v8 }
0x1437   :  { %v2556_v7 = vpop.eup %2555 }
0x1438   :  { %v1933_v39 = vadd.f32 1.0, %v2556_v7 }
0x143a   :  { %v1935_v44 = vmul.f32 %v1933_v39, %v1927_v42 }
0x143b   :  { %v2558_v41 = vpop.eup %2557 }
0x143c   :  { %v1934_v43 = vadd.f32 1.0, %v2558_v41 }
0x143e   :  { %v1936_v31 = vmul.f32 %v1934_v43, %v1928_v40 }
0x1440   :  { %v1937_v45 = vpack.c.bf16 %v1936_v31, %v1935_v44 }
0x1442   :  { %2448 = vmatmul.mubr.msk.bf16.vlgmr.msra.gmra.mxu1 %vm1112_vm12, %v1937_v45 }
0x1502   :  { %v2016_v47 = vpop.f32.mrf.mxu1 }
0x1503   :  { %v2017_v48 = vadd.f32 %v2179_v46, %v2016_v47 }
0x1504   :  { %v2449_v51 = vpop.f32.mrf.mxu1 }
0x1505   :  { %v2023_v52 = vadd.f32 %v2017_v48, %v1855_v27 }
0x1506   :  { %v2019_v53 = vpop.f32.mrf.mxu1 }
0x1507   :  { %v2020_v54 = vadd.f32 %v2179_v46, %v2019_v53  ;;  %v2029_v55 = vsel %vm281_vm7, %v2023_v52, 0.0 }
0x1508   :  { %2030 = vadd.xlane.f32.xlu1 %v2029_v55  ;;  %v2450_v56 = vpop.f32.mrf.mxu1 }
0x1509   :  { %v2024_v57 = vadd.f32 %v2020_v54, %v1856_v28 }
0x150b   :  { %v2032_v58 = vsel %vm281_vm7, %v2024_v57, 0.0 }
0x150c   :  { %2033 = vadd.xlane.f32.xlu0 %v2032_v58 }
0x1591   :  { %v2031_v59 = vpop.xlane.xlu1 %2030 }
0x1592   :  { %v2035_v60 = vmul.f32 0.03125, %v2031_v59 }
0x1594   :  { %v2037_v63 = vsub.f32 %v2023_v52, %v2035_v60 }
0x1595   :  { %v2034_v0 = vpop.xlane.xlu0 %2033 }
0x1596   :  { %v2036_v1 = vmul.f32 0.03125, %v2034_v0  ;;  %v2039_v2 = vmul.f32 %v2037_v63, %v2037_v63 }
0x1598   :  { %v2038_v3 = vsub.f32 %v2024_v57, %v2036_v1  ;;  %v2041_v5 = vsel %vm281_vm7, %v2039_v2, 0.0 }
0x1599   :  { %2042 = vadd.xlane.f32.xlu1 %v2041_v5 }
0x159a   :  { %v2040_v10 = vmul.f32 %v2038_v3, %v2038_v3 }
0x159c   :  { %v2044_v49 = vsel %vm281_vm7, %v2040_v10, 0.0 }
0x159d   :  { %2045 = vadd.xlane.f32.xlu0 %v2044_v49 }
0x1622   :  { %v2043_v12 = vpop.xlane.xlu1 %2042 }
0x1623   :  { %v2047_v13 = vmul.f32 0.03125, %v2043_v12 }
0x1625   :  { %v2049_v50 = vadd.f32 1e-12, %v2047_v13 }
0x1626   :  { %v2046_v11 = vpop.xlane.xlu0 %2045 }
0x1627   :  { %2559 = vrsqrt.f32 %v2049_v50  ;;  %v2048_v14 = vmul.f32 0.03125, %v2046_v11 }
0x1629   :  { %v2050_v15 = vadd.f32 1e-12, %v2048_v14 }
0x162b   :  { %2561 = vrsqrt.f32 %v2050_v15 }
0x1634   :  { %v2560_v4 = vpop.eup %2559 }
0x1635   :  { %v2053_v9 = vmul.f32 %v2560_v4, %v2037_v63 }
0x1637   :  { %v2061_v19 = vmul.f32 %v2187_v6, %v2053_v9 }
0x1638   :  { %v2562_v20 = vpop.eup %2561 }
0x1639   :  { %v2054_v21 = vmul.f32 %v2562_v20, %v2038_v3  ;;  %v2069_v22 = vadd.f32 %v2188_v16, %v2061_v19 }
0x163b   :  { %v2062_v23 = vmul.f32 %v2187_v6, %v2054_v21  ;;  %2071 = vst.msk [vmem:[#allocation2] sm:$0xff] %vm281_vm7, %v2069_v22 }
0x163d   :  { %v2070_v24 = vadd.f32 %v2188_v16, %v2062_v23 }
0x163f   :  { %2072 = vst.msk [vmem:[#allocation2 + $0x8] sm:$0xff] %vm281_vm7, %v2070_v24 }
0x1640   :  { %2574 = shalt.err (!%p2571_p4)
}
0x1641   :  { %s2593_s18 = smov 128   ;;  %s2594_s19 = smov 8  }
0x1642   :  { %2084 = dma.vmem_to_hbm [thread:$0]  %s2079_s4, 256, %s3148_s20, [#allocation3], %s2593_s18, %s2593_s18, %s2594_s19  }
0x1643   :  { %2583 = dma.done.wait [#allocation3], 256  }
0x1644   :  { %2584 = vsyncadd [#allocation3], 4294967040 }
0x1645   :  { %2088 = vsyncpa [#allocation3], 1 }

</bundles_post_ra>
